<compile_context>
chip_gen: v5e
topology: v5e:2x2
jax: 0.10.0
libtpu: 0.0.40
codegen_flags: <defaults>
</compile_context>

<pallas_src>
import jax
import jax.numpy as jnp
from jax import lax
from jax.experimental import pallas as pl
from jax.experimental.pallas import tpu as pltpu


def _round_up(n, m):
    return ((n + m - 1) // m) * m


def _fused_lstm_kernel(x_ref, wih_ref, whh_ref, b_ref, h0_ref, c0_ref,
                       out_ref, hn_ref, cn_ref,
                       gx_scr, seq_scr, h_scr, c_scr):
    """Fused multi-layer LSTM.  grid=(n_layer,); one grid step == one full layer."""
    layer = pl.program_id(0)
    n_layers = pl.num_programs(0)

    T, B, Hg = seq_scr.shape
    G = gx_scr.shape[2]            # 4 * Hg  (gate-packed, 128-lane multiple)
    Hg3 = 3 * Hg

    # ---- Layer 0: wrapper already delivers x time-major & gate-lane padded ----
    @pl.when(layer == 0)
    def _():
        seq_scr[...] = x_ref[...]                               # (T, B, Hg) memcpy

    # ---- Phase 1: hoisted input projection for ALL timesteps (one MXU matmul) ----
    wih = wih_ref[0]                                            # (Hg, 4Hg)
    bias = b_ref[0]                                             # (1, 4Hg)
    xin = seq_scr[...].reshape(T * B, Hg)                       # previous layer's output
    gx = jnp.dot(xin, wih, preferred_element_type=jnp.float32) + bias
    gx_scr[...] = gx.reshape(T, B, G)

    # ---- Phase 2: sequential recurrence — only h @ W_hh^T on the serial path ----
    whh = whh_ref[0]                                            # (Hg, 4Hg)
    h_scr[...] = h0_ref[0]
    c_scr[...] = c0_ref[0]

    # gates packed [i | f | o | g]: sigmoid on lanes [0,3Hg), tanh on [3Hg,4Hg)
    sig_mask = lax.broadcasted_iota(jnp.int32, (B, G), 1) < Hg3

    def step(t, carry):
        h = h_scr[...]
        c = c_scr[...]
        pre = gx_scr[t] + jnp.dot(h, whh, preferred_element_type=jnp.float32)
        act = jnp.where(sig_mask, jax.nn.sigmoid(pre), jnp.tanh(pre))
        i = act[:, 0:Hg]
        f = act[:, Hg:2 * Hg]
        o = act[:, 2 * Hg:Hg3]
        g = act[:, Hg3:G]
        c_new = f * c + i * g
        h_new = o * jnp.tanh(c_new)
        c_scr[...] = c_new
        h_scr[...] = h_new
        seq_scr[t] = h_new                                      # becomes next layer's input
        return carry

    # Capped unroll: full only for short T (avoids vreg-spill blowup at realistic T).
    lax.fori_loop(0, T, step, 0, unroll=min(T, 8))

    # ---- Layer epilogue: final h/c for this layer (whole-slab stores, no :H slice) ----
    hn_ref[0] = h_scr[...]
    cn_ref[0] = c_scr[...]

    # ---- Last layer: dump the time-major sequence slab once (no in-kernel transpose) ----
    @pl.when(layer == n_layers - 1)
    def _():
        out_ref[...] = seq_scr[...]


def _tile_padded_elems(shape):
    """f32 element count after padding the trailing (sublane, lane) dims to (8, 128)."""
    s = list(shape)
    s[-1] = _round_up(s[-1], 128)
    if len(s) >= 2:
        s[-2] = _round_up(s[-2], 8)
    n = 1
    for d in s:
        n *= d
    return n


def _vmem_budget_bytes(T, B, Hg, G):
    nbuf = 2  # default double-buffering of every pipelined block
    blocks = nbuf * (
        _tile_padded_elems((T, B, Hg))          # x (time-major)
        + 2 * _tile_padded_elems((Hg, G))       # W_ih^T, W_hh^T
        + _tile_padded_elems((1, G))            # fused bias
        + 2 * _tile_padded_elems((B, Hg))       # h0, c0
        + _tile_padded_elems((T, B, Hg))        # out slab
        + 2 * _tile_padded_elems((B, Hg))       # h_n, c_n
    )
    scratch = (_tile_padded_elems((T, B, G)) + _tile_padded_elems((T, B, Hg))
               + 2 * _tile_padded_elems((B, Hg)))
    est = 4 * (blocks + scratch)                # f32 bytes
    # 3x headroom for compiler-internal scratch; clamp to sane cross-generation bounds.
    return int(min(max(3 * est, 8 * 1024 * 1024), 56 * 1024 * 1024))


@jax.jit
def decoder_lstm_forward(x, h, packed_params, encoder_outs=None):
    """Mirror of Decoder_LSTM.forward with attn_flag=False.

    x: (B, T, model_size)  batch_first
    h: (h0, c0), each (n_layer, B, model_size)
    packed_params: (wih_all (L,Hg,4Hg), whh_all (L,Hg,4Hg), b_all (L,1,4Hg))
    returns (out (B, T, H), (h_n, c_n))
    """
    # TODO(synk): self.attention is an externally injected module; attn_flag=False here,
    # and nn.LSTM dropout only acts between layers in training mode -> both are no-ops.
    wih_all, whh_all, b_all = packed_params
    h0_all, c0_all = h
    L, Hg, G = wih_all.shape
    B, T, D = x.shape
    H = h0_all.shape[2]

    # Wrapper-side relayout (cheap XLA copies that overlap with kernel start):
    # batch-first -> time-major; pad feature / state lanes to Hg with zeros.
    x_tm = jnp.pad(jnp.transpose(x.astype(jnp.float32), (1, 0, 2)),
                   ((0, 0), (0, 0), (0, Hg - D)))
    h0_p = jnp.pad(h0_all.astype(jnp.float32), ((0, 0), (0, 0), (0, Hg - H)))
    c0_p = jnp.pad(c0_all.astype(jnp.float32), ((0, 0), (0, 0), (0, Hg - H)))

    grid_spec = pltpu.PrefetchScalarGridSpec(
        num_scalar_prefetch=0,
        grid=(L,),                                            # layers are sequential
        in_specs=[
            pl.BlockSpec((T, B, Hg), lambda l: (0, 0, 0)),    # x, time-major (fetched once)
            pl.BlockSpec((1, Hg, G), lambda l: (l, 0, 0)),    # W_ih^T of layer l
            pl.BlockSpec((1, Hg, G), lambda l: (l, 0, 0)),    # W_hh^T of layer l
            pl.BlockSpec((1, 1, G), lambda l: (l, 0, 0)),     # fused bias of layer l
            pl.BlockSpec((1, B, Hg), lambda l: (l, 0, 0)),    # h0 of layer l
            pl.BlockSpec((1, B, Hg), lambda l: (l, 0, 0)),    # c0 of layer l
        ],
        out_specs=[
            pl.BlockSpec((T, B, Hg), lambda l: (0, 0, 0)),    # out slab (resident; last layer)
            pl.BlockSpec((1, B, Hg), lambda l: (l, 0, 0)),    # h_n per layer
            pl.BlockSpec((1, B, Hg), lambda l: (l, 0, 0)),    # c_n per layer
        ],
        scratch_shapes=[
            pltpu.VMEM((T, B, G), jnp.float32),               # hoisted input-proj gates
            pltpu.VMEM((T, B, Hg), jnp.float32),              # layer activation slab
            pltpu.VMEM((B, Hg), jnp.float32),                 # h carry
            pltpu.VMEM((B, Hg), jnp.float32),                 # c carry
        ],
    )

    out_tm, h_n, c_n = pl.pallas_call(
        _fused_lstm_kernel,
        out_shape=(
            jax.ShapeDtypeStruct((T, B, Hg), jnp.float32),
            jax.ShapeDtypeStruct((L, B, Hg), jnp.float32),
            jax.ShapeDtypeStruct((L, B, Hg), jnp.float32),
        ),
        grid_spec=grid_spec,
        compiler_params=pltpu.CompilerParams(
            dimension_semantics=("arbitrary",),
            vmem_limit_bytes=_vmem_budget_bytes(T, B, Hg, G)),
    )(x_tm, wih_all, whh_all, b_all, h0_p, c0_p)

    # Wrapper-side epilogue: :H slice + time-major -> batch-first transpose (cheap XLA).
    out = jnp.transpose(out_tm[:, :, :H], (1, 0, 2))
    return out, (h_n[:, :, :H], c_n[:, :, :H])


def make_params(key, n_layer, model_size):
    """PyTorch-style nn.LSTM init: uniform(-1/sqrt(H), 1/sqrt(H)); gate order i,f,g,o."""
    H = model_size
    bound = 1.0 / float(H) ** 0.5
    params = []
    for _ in range(n_layer):
        key, k1, k2, k3, k4 = jax.random.split(key, 5)
        w_ih = jax.random.uniform(k1, (4 * H, model_size), jnp.float32, -bound, bound)
        w_hh = jax.random.uniform(k2, (4 * H, H), jnp.float32, -bound, bound)
        b_ih = jax.random.uniform(k3, (4 * H,), jnp.float32, -bound, bound)
        b_hh = jax.random.uniform(k4, (4 * H,), jnp.float32, -bound, bound)
        params.append((w_ih, w_hh, b_ih, b_hh))
    return params


def pack_params(params, model_size):
    """Pad/transpose/reorder PyTorch-layout LSTM weights for the fused kernel.

    Gates are packed contiguously, each padded to Hg = round_up(H, 32) lanes so the
    packed gate dim 4*Hg is a 128-lane multiple, and reordered from PyTorch's
    [i, f, g, o] to [i, f, o, g] so the three sigmoid gates occupy lanes [0, 3*Hg)
    and tanh occupies [3*Hg, 4*Hg).  The contraction (input/hidden) dim is padded to
    Hg rows with zeros, so padded h/c lanes stay exactly 0 through the recurrence
    (zero pre-activation -> sigmoid(0)=0.5 gates multiply a zero state; tanh(0)=0).
    """
    H = model_size
    Hg = _round_up(H, 32)
    perm = jnp.array([0, 1, 3, 2])                   # [i,f,g,o] -> [i,f,o,g]

    def pack_w(w):                                   # w: (4H, K) PyTorch layout
        K = w.shape[1]
        w4 = w.reshape(4, H, K)[perm]                                   # (4, H, K)
        w4 = jnp.pad(w4, ((0, 0), (0, Hg - H), (0, Hg - K)))            # (4, Hg, Hg)
        return jnp.transpose(w4, (2, 0, 1)).reshape(Hg, 4 * Hg)         # W^T, gate-packed

    wih, whh, bias = [], [], []
    for (w_ih, w_hh, b_ih, b_hh) in params:
        wih.append(pack_w(w_ih))
        whh.append(pack_w(w_hh))
        b = (b_ih + b_hh).reshape(4, H)[perm]
        bias.append(jnp.pad(b, ((0, 0), (0, Hg - H))).reshape(1, 4 * Hg))
    return (jnp.stack(wih, 0), jnp.stack(whh, 0), jnp.stack(bias, 0))


def _lstm_reference(x, h, params):
    """Pure-JAX reference (lax.scan) with identical semantics, for verification."""
    h0_all, c0_all = h
    layer_in = jnp.transpose(x, (1, 0, 2)).astype(jnp.float32)        # (T, B, D)
    h_ns, c_ns = [], []
    for li, (w_ih, w_hh, b_ih, b_hh) in enumerate(params):
        H = w_hh.shape[1]
        w_ih_t, w_hh_t, bias = w_ih.T, w_hh.T, (b_ih + b_hh)[None, :]

        def step(carry, x_t, w_ih_t=w_ih_t, w_hh_t=w_hh_t, bias=bias, H=H):
            hh, cc = carry
            gates = x_t @ w_ih_t + hh @ w_hh_t + bias
            i = jax.nn.sigmoid(gates[:, 0 * H:1 * H])
            f = jax.nn.sigmoid(gates[:, 1 * H:2 * H])
            g = jnp.tanh(gates[:, 2 * H:3 * H])
            o = jax.nn.sigmoid(gates[:, 3 * H:4 * H])
            cc = f * cc + i * g
            hh = o * jnp.tanh(cc)
            return (hh, cc), hh

        (h_f, c_f), ys = lax.scan(step, (h0_all[li], c0_all[li]), layer_in)
        h_ns.append(h_f)
        c_ns.append(c_f)
        layer_in = ys
    out = jnp.transpose(layer_in, (1, 0, 2))
    return out, (jnp.stack(h_ns, 0), jnp.stack(c_ns, 0))


if __name__ == "__main__":
    B, T, MODEL_SIZE, N_LAYER = 2, 8, 32, 2

    key = jax.random.PRNGKey(0)
    key, kx, kh, kc = jax.random.split(key, 4)

    x = jax.random.normal(kx, (B, T, MODEL_SIZE), jnp.float32)
    h0 = jax.random.normal(kh, (N_LAYER, B, MODEL_SIZE), jnp.float32)
    c0 = jax.random.normal(kc, (N_LAYER, B, MODEL_SIZE), jnp.float32)

    params = make_params(key, N_LAYER, MODEL_SIZE)
    packed = pack_params(params, MODEL_SIZE)

    out, (h_n, c_n) = decoder_lstm_forward(x, (h0, c0), packed)
    jax.block_until_ready((out, h_n, c_n))

    # Sanity-check against a pure-JAX reference of the same math.
    out_ref, (h_ref, c_ref) = _lstm_reference(x, (h0, c0), params)
    assert out.shape == (B, T, MODEL_SIZE)
    assert h_n.shape == (N_LAYER, B, MODEL_SIZE)
    assert c_n.shape == (N_LAYER, B, MODEL_SIZE)
    assert jnp.allclose(out, out_ref, atol=1e-4, rtol=1e-4)
    assert jnp.allclose(h_n, h_ref, atol=1e-4, rtol=1e-4)
    assert jnp.allclose(c_n, c_ref, atol=1e-4, rtol=1e-4)

    print("KERNEL_OK")
</pallas_src>

<mosaic_0001>
module attributes {stable_mosaic.version = 11 : i64} {
  func.func @_fused_lstm_kernel(%arg0: i32, %arg1: memref<8x2x32xf32, #tpu.memory_space<vmem>>, %arg2: memref<1x32x128xf32, #tpu.memory_space<vmem>>, %arg3: memref<1x32x128xf32, #tpu.memory_space<vmem>>, %arg4: memref<1x1x128xf32, #tpu.memory_space<vmem>>, %arg5: memref<1x2x32xf32, #tpu.memory_space<vmem>>, %arg6: memref<1x2x32xf32, #tpu.memory_space<vmem>>, %arg7: memref<8x2x32xf32, #tpu.memory_space<vmem>>, %arg8: memref<1x2x32xf32, #tpu.memory_space<vmem>>, %arg9: memref<1x2x32xf32, #tpu.memory_space<vmem>>, %arg10: memref<8x2x128xf32, #tpu.memory_space<vmem>>, %arg11: memref<8x2x32xf32, #tpu.memory_space<vmem>>, %arg12: memref<2x32xf32, #tpu.memory_space<vmem>>, %arg13: memref<2x32xf32, #tpu.memory_space<vmem>>) attributes {dimension_semantics = [#tpu.dimension_semantics<arbitrary>], iteration_bounds = array<i64: 2>, scalar_prefetch = 0 : i64, scratch_operands = 4 : i64, tpu.core_type = #tpu.core_type<tc>, window_params = [{pipeline_mode = #tpu.pipeline_mode<synchronous>, transform_indices = @transform_0, window_bounds = array<i64: 8, 2, 32>}, {transform_indices = @transform_1, window_bounds = array<i64: 1, 32, 128>}, {transform_indices = @transform_2, window_bounds = array<i64: 1, 32, 128>}, {transform_indices = @transform_3, window_bounds = array<i64: 1, 1, 128>}, {transform_indices = @transform_4, window_bounds = array<i64: 1, 2, 32>}, {transform_indices = @transform_5, window_bounds = array<i64: 1, 2, 32>}, {pipeline_mode = #tpu.pipeline_mode<synchronous>, transform_indices = @transform_6, window_bounds = array<i64: 8, 2, 32>}, {transform_indices = @transform_7, window_bounds = array<i64: 1, 2, 32>}, {transform_indices = @transform_8, window_bounds = array<i64: 1, 2, 32>}]} {
    %c0_i32 = arith.constant 0 : i32
    %0 = arith.cmpi eq, %arg0, %c0_i32 : i32
    %1 = arith.extui %0 : i1 to i32
    %c0_i32_0 = arith.constant 0 : i32
    %2 = arith.cmpi ne, %1, %c0_i32_0 : i32
    scf.if %2 {
      %c0_150 = arith.constant 0 : index
      %c0_151 = arith.constant 0 : index
      %c0_152 = arith.constant 0 : index
      %268 = vector.load %arg1[%c0_150, %c0_151, %c0_152] : memref<8x2x32xf32, #tpu.memory_space<vmem>>, vector<8x2x32xf32>
      %c0_153 = arith.constant 0 : index
      %c0_154 = arith.constant 0 : index
      %c0_155 = arith.constant 0 : index
      %269 = vector.load %arg11[%c0_153, %c0_154, %c0_155] : memref<8x2x32xf32, #tpu.memory_space<vmem>>, vector<8x2x32xf32>
      tpu.vector_store %arg11[%c0_153, %c0_154, %c0_155], %268 {strides = array<i32>} : memref<8x2x32xf32, #tpu.memory_space<vmem>>, vector<8x2x32xf32>,
    } else {
    }
    %c0 = arith.constant 0 : index
    %c0_1 = arith.constant 0 : index
    %c0_2 = arith.constant 0 : index
    %3 = vector.load %arg2[%c0, %c0_1, %c0_2] : memref<1x32x128xf32, #tpu.memory_space<vmem>>, vector<1x32x128xf32>
    %4 = vector.shape_cast %3 : vector<1x32x128xf32> to vector<32x128xf32>
    %c0_3 = arith.constant 0 : index
    %c0_4 = arith.constant 0 : index
    %c0_5 = arith.constant 0 : index
    %5 = vector.load %arg4[%c0_3, %c0_4, %c0_5] : memref<1x1x128xf32, #tpu.memory_space<vmem>>, vector<1x1x128xf32>
    %6 = vector.shape_cast %5 : vector<1x1x128xf32> to vector<1x128xf32>
    %c0_6 = arith.constant 0 : index
    %c0_7 = arith.constant 0 : index
    %c0_8 = arith.constant 0 : index
    %7 = vector.load %arg11[%c0_6, %c0_7, %c0_8] : memref<8x2x32xf32, #tpu.memory_space<vmem>>, vector<8x2x32xf32>
    %8 = vector.shape_cast %7 : vector<8x2x32xf32> to vector<16x32xf32>
    %cst = arith.constant dense<0.000000e+00> : vector<16x128xf32>
    %9 = tpu.matmul %8, %4, %cst {dimension_numbers = #tpu.dot_dimension_numbers<[1], [0], [0], [1], [0, 0, 1, 1], [], []>} : vector<16x32xf32>, vector<32x128xf32>, vector<16x128xf32> -> vector<16x128xf32>
    %10 = vector.broadcast %6 : vector<1x128xf32> to vector<16x128xf32>
    %11 = arith.addf %9, %10 : vector<16x128xf32>
    %12 = vector.shape_cast %11 : vector<16x128xf32> to vector<8x2x128xf32>
    %c0_9 = arith.constant 0 : index
    %c0_10 = arith.constant 0 : index
    %c0_11 = arith.constant 0 : index
    %13 = vector.load %arg10[%c0_9, %c0_10, %c0_11] : memref<8x2x128xf32, #tpu.memory_space<vmem>>, vector<8x2x128xf32>
    tpu.vector_store %arg10[%c0_9, %c0_10, %c0_11], %12 {strides = array<i32>} : memref<8x2x128xf32, #tpu.memory_space<vmem>>, vector<8x2x128xf32>,
    %c0_12 = arith.constant 0 : index
    %c0_13 = arith.constant 0 : index
    %c0_14 = arith.constant 0 : index
    %14 = vector.load %arg3[%c0_12, %c0_13, %c0_14] : memref<1x32x128xf32, #tpu.memory_space<vmem>>, vector<1x32x128xf32>
    %15 = vector.shape_cast %14 : vector<1x32x128xf32> to vector<32x128xf32>
    %c0_15 = arith.constant 0 : index
    %c0_16 = arith.constant 0 : index
    %c0_17 = arith.constant 0 : index
    %16 = vector.load %arg5[%c0_15, %c0_16, %c0_17] : memref<1x2x32xf32, #tpu.memory_space<vmem>>, vector<1x2x32xf32>
    %17 = vector.shape_cast %16 : vector<1x2x32xf32> to vector<2x32xf32>
    %c0_18 = arith.constant 0 : index
    %c0_19 = arith.constant 0 : index
    %18 = vector.load %arg12[%c0_18, %c0_19] : memref<2x32xf32, #tpu.memory_space<vmem>>, vector<2x32xf32>
    tpu.vector_store %arg12[%c0_18, %c0_19], %17 {strides = array<i32>} : memref<2x32xf32, #tpu.memory_space<vmem>>, vector<2x32xf32>,
    %c0_20 = arith.constant 0 : index
    %c0_21 = arith.constant 0 : index
    %c0_22 = arith.constant 0 : index
    %19 = vector.load %arg6[%c0_20, %c0_21, %c0_22] : memref<1x2x32xf32, #tpu.memory_space<vmem>>, vector<1x2x32xf32>
    %20 = vector.shape_cast %19 : vector<1x2x32xf32> to vector<2x32xf32>
    %c0_23 = arith.constant 0 : index
    %c0_24 = arith.constant 0 : index
    %21 = vector.load %arg13[%c0_23, %c0_24] : memref<2x32xf32, #tpu.memory_space<vmem>>, vector<2x32xf32>
    tpu.vector_store %arg13[%c0_23, %c0_24], %20 {strides = array<i32>} : memref<2x32xf32, #tpu.memory_space<vmem>>, vector<2x32xf32>,
    %22 = tpu.iota {dimensions = array<i32: 1>} : vector<2x128xi32>
    %c96_i32 = arith.constant 96 : i32
    %23 = vector.broadcast %c96_i32 : i32 to vector<2x128xi32>
    %24 = arith.cmpi slt, %22, %23 : vector<2x128xi32>
    %c0_i32_25 = arith.constant 0 : i32
    %c0_26 = arith.constant 0 : index
    %c0_27 = arith.constant 0 : index
    %25 = vector.load %arg12[%c0_26, %c0_27] : memref<2x32xf32, #tpu.memory_space<vmem>>, vector<2x32xf32>
    %c0_28 = arith.constant 0 : index
    %c0_29 = arith.constant 0 : index
    %26 = vector.load %arg13[%c0_28, %c0_29] : memref<2x32xf32, #tpu.memory_space<vmem>>, vector<2x32xf32>
    %27 = arith.index_cast %c0_i32_25 : i32 to index
    %c0_30 = arith.constant 0 : index
    %c0_31 = arith.constant 0 : index
    %28 = vector.load %arg10[%27, %c0_30, %c0_31] : memref<8x2x128xf32, #tpu.memory_space<vmem>>, vector<1x2x128xf32>
    %29 = vector.shape_cast %28 : vector<1x2x128xf32> to vector<2x128xf32>
    %cst_32 = arith.constant dense<0.000000e+00> : vector<2x128xf32>
    %30 = tpu.matmul %25, %15, %cst_32 {dimension_numbers = #tpu.dot_dimension_numbers<[1], [0], [0], [1], [0, 0, 1, 1], [], []>} : vector<2x32xf32>, vector<32x128xf32>, vector<2x128xf32> -> vector<2x128xf32>
    %31 = arith.addf %29, %30 : vector<2x128xf32>
    %32 = arith.negf %31 : vector<2x128xf32>
    %33 = math.exp %32 : vector<2x128xf32>
    %cst_33 = arith.constant 1.000000e+00 : f32
    %34 = vector.broadcast %cst_33 : f32 to vector<2x128xf32>
    %35 = arith.addf %34, %33 : vector<2x128xf32>
    %36 = arith.divf %34, %35 : vector<2x128xf32>
    %37 = math.tanh %31 : vector<2x128xf32>
    %38 = arith.select %24, %36, %37 : vector<2x128xi1>, vector<2x128xf32>
    %39 = vector.extract_strided_slice %38 {offsets = [0, 0], sizes = [2, 32], strides = [1, 1]} : vector<2x128xf32> to vector<2x32xf32>
    %40 = vector.extract_strided_slice %38 {offsets = [0, 32], sizes = [2, 32], strides = [1, 1]} : vector<2x128xf32> to vector<2x32xf32>
    %41 = vector.extract_strided_slice %38 {offsets = [0, 64], sizes = [2, 32], strides = [1, 1]} : vector<2x128xf32> to vector<2x32xf32>
    %42 = vector.extract_strided_slice %38 {offsets = [0, 96], sizes = [2, 32], strides = [1, 1]} : vector<2x128xf32> to vector<2x32xf32>
    %43 = arith.mulf %40, %26 : vector<2x32xf32>
    %44 = arith.mulf %39, %42 : vector<2x32xf32>
    %45 = arith.addf %43, %44 : vector<2x32xf32>
    %46 = math.tanh %45 : vector<2x32xf32>
    %47 = arith.mulf %41, %46 : vector<2x32xf32>
    %c0_34 = arith.constant 0 : index
    %c0_35 = arith.constant 0 : index
    %48 = vector.load %arg13[%c0_34, %c0_35] : memref<2x32xf32, #tpu.memory_space<vmem>>, vector<2x32xf32>
    tpu.vector_store %arg13[%c0_34, %c0_35], %45 {strides = array<i32>} : memref<2x32xf32, #tpu.memory_space<vmem>>, vector<2x32xf32>,
    %c0_36 = arith.constant 0 : index
    %c0_37 = arith.constant 0 : index
    %49 = vector.load %arg12[%c0_36, %c0_37] : memref<2x32xf32, #tpu.memory_space<vmem>>, vector<2x32xf32>
    tpu.vector_store %arg12[%c0_36, %c0_37], %47 {strides = array<i32>} : memref<2x32xf32, #tpu.memory_space<vmem>>, vector<2x32xf32>,
    %50 = arith.index_cast %c0_i32_25 : i32 to index
    %c0_38 = arith.constant 0 : index
    %c0_39 = arith.constant 0 : index
    %51 = vector.load %arg11[%50, %c0_38, %c0_39] : memref<8x2x32xf32, #tpu.memory_space<vmem>>, vector<1x2x32xf32>
    %52 = vector.shape_cast %51 : vector<1x2x32xf32> to vector<2x32xf32>
    %53 = vector.shape_cast %47 : vector<2x32xf32> to vector<1x2x32xf32>
    tpu.vector_store %arg11[%50, %c0_38, %c0_39], %53 {strides = array<i32>} : memref<8x2x32xf32, #tpu.memory_space<vmem>>, vector<1x2x32xf32>,
    %c1_i32 = arith.constant 1 : i32
    %c0_40 = arith.constant 0 : index
    %c0_41 = arith.constant 0 : index
    %54 = vector.load %arg12[%c0_40, %c0_41] : memref<2x32xf32, #tpu.memory_space<vmem>>, vector<2x32xf32>
    %c0_42 = arith.constant 0 : index
    %c0_43 = arith.constant 0 : index
    %55 = vector.load %arg13[%c0_42, %c0_43] : memref<2x32xf32, #tpu.memory_space<vmem>>, vector<2x32xf32>
    %56 = arith.index_cast %c1_i32 : i32 to index
    %c0_44 = arith.constant 0 : index
    %c0_45 = arith.constant 0 : index
    %57 = vector.load %arg10[%56, %c0_44, %c0_45] : memref<8x2x128xf32, #tpu.memory_space<vmem>>, vector<1x2x128xf32>
    %58 = vector.shape_cast %57 : vector<1x2x128xf32> to vector<2x128xf32>
    %cst_46 = arith.constant dense<0.000000e+00> : vector<2x128xf32>
    %59 = tpu.matmul %54, %15, %cst_46 {dimension_numbers = #tpu.dot_dimension_numbers<[1], [0], [0], [1], [0, 0, 1, 1], [], []>} : vector<2x32xf32>, vector<32x128xf32>, vector<2x128xf32> -> vector<2x128xf32>
    %60 = arith.addf %58, %59 : vector<2x128xf32>
    %61 = arith.negf %60 : vector<2x128xf32>
    %62 = math.exp %61 : vector<2x128xf32>
    %cst_47 = arith.constant 1.000000e+00 : f32
    %63 = vector.broadcast %cst_47 : f32 to vector<2x128xf32>
    %64 = arith.addf %63, %62 : vector<2x128xf32>
    %65 = arith.divf %63, %64 : vector<2x128xf32>
    %66 = math.tanh %60 : vector<2x128xf32>
    %67 = arith.select %24, %65, %66 : vector<2x128xi1>, vector<2x128xf32>
    %68 = vector.extract_strided_slice %67 {offsets = [0, 0], sizes = [2, 32], strides = [1, 1]} : vector<2x128xf32> to vector<2x32xf32>
    %69 = vector.extract_strided_slice %67 {offsets = [0, 32], sizes = [2, 32], strides = [1, 1]} : vector<2x128xf32> to vector<2x32xf32>
    %70 = vector.extract_strided_slice %67 {offsets = [0, 64], sizes = [2, 32], strides = [1, 1]} : vector<2x128xf32> to vector<2x32xf32>
    %71 = vector.extract_strided_slice %67 {offsets = [0, 96], sizes = [2, 32], strides = [1, 1]} : vector<2x128xf32> to vector<2x32xf32>
    %72 = arith.mulf %69, %55 : vector<2x32xf32>
    %73 = arith.mulf %68, %71 : vector<2x32xf32>
    %74 = arith.addf %72, %73 : vector<2x32xf32>
    %75 = math.tanh %74 : vector<2x32xf32>
    %76 = arith.mulf %70, %75 : vector<2x32xf32>
    %c0_48 = arith.constant 0 : index
    %c0_49 = arith.constant 0 : index
    %77 = vector.load %arg13[%c0_48, %c0_49] : memref<2x32xf32, #tpu.memory_space<vmem>>, vector<2x32xf32>
    tpu.vector_store %arg13[%c0_48, %c0_49], %74 {strides = array<i32>} : memref<2x32xf32, #tpu.memory_space<vmem>>, vector<2x32xf32>,
    %c0_50 = arith.constant 0 : index
    %c0_51 = arith.constant 0 : index
    %78 = vector.load %arg12[%c0_50, %c0_51] : memref<2x32xf32, #tpu.memory_space<vmem>>, vector<2x32xf32>
    tpu.vector_store %arg12[%c0_50, %c0_51], %76 {strides = array<i32>} : memref<2x32xf32, #tpu.memory_space<vmem>>, vector<2x32xf32>,
    %79 = arith.index_cast %c1_i32 : i32 to index
    %c0_52 = arith.constant 0 : index
    %c0_53 = arith.constant 0 : index
    %80 = vector.load %arg11[%79, %c0_52, %c0_53] : memref<8x2x32xf32, #tpu.memory_space<vmem>>, vector<1x2x32xf32>
    %81 = vector.shape_cast %80 : vector<1x2x32xf32> to vector<2x32xf32>
    %82 = vector.shape_cast %76 : vector<2x32xf32> to vector<1x2x32xf32>
    tpu.vector_store %arg11[%79, %c0_52, %c0_53], %82 {strides = array<i32>} : memref<8x2x32xf32, #tpu.memory_space<vmem>>, vector<1x2x32xf32>,
    %c2_i32 = arith.constant 2 : i32
    %c0_54 = arith.constant 0 : index
    %c0_55 = arith.constant 0 : index
    %83 = vector.load %arg12[%c0_54, %c0_55] : memref<2x32xf32, #tpu.memory_space<vmem>>, vector<2x32xf32>
    %c0_56 = arith.constant 0 : index
    %c0_57 = arith.constant 0 : index
    %84 = vector.load %arg13[%c0_56, %c0_57] : memref<2x32xf32, #tpu.memory_space<vmem>>, vector<2x32xf32>
    %85 = arith.index_cast %c2_i32 : i32 to index
    %c0_58 = arith.constant 0 : index
    %c0_59 = arith.constant 0 : index
    %86 = vector.load %arg10[%85, %c0_58, %c0_59] : memref<8x2x128xf32, #tpu.memory_space<vmem>>, vector<1x2x128xf32>
    %87 = vector.shape_cast %86 : vector<1x2x128xf32> to vector<2x128xf32>
    %cst_60 = arith.constant dense<0.000000e+00> : vector<2x128xf32>
    %88 = tpu.matmul %83, %15, %cst_60 {dimension_numbers = #tpu.dot_dimension_numbers<[1], [0], [0], [1], [0, 0, 1, 1], [], []>} : vector<2x32xf32>, vector<32x128xf32>, vector<2x128xf32> -> vector<2x128xf32>
    %89 = arith.addf %87, %88 : vector<2x128xf32>
    %90 = arith.negf %89 : vector<2x128xf32>
    %91 = math.exp %90 : vector<2x128xf32>
    %cst_61 = arith.constant 1.000000e+00 : f32
    %92 = vector.broadcast %cst_61 : f32 to vector<2x128xf32>
    %93 = arith.addf %92, %91 : vector<2x128xf32>
    %94 = arith.divf %92, %93 : vector<2x128xf32>
    %95 = math.tanh %89 : vector<2x128xf32>
    %96 = arith.select %24, %94, %95 : vector<2x128xi1>, vector<2x128xf32>
    %97 = vector.extract_strided_slice %96 {offsets = [0, 0], sizes = [2, 32], strides = [1, 1]} : vector<2x128xf32> to vector<2x32xf32>
    %98 = vector.extract_strided_slice %96 {offsets = [0, 32], sizes = [2, 32], strides = [1, 1]} : vector<2x128xf32> to vector<2x32xf32>
    %99 = vector.extract_strided_slice %96 {offsets = [0, 64], sizes = [2, 32], strides = [1, 1]} : vector<2x128xf32> to vector<2x32xf32>
    %100 = vector.extract_strided_slice %96 {offsets = [0, 96], sizes = [2, 32], strides = [1, 1]} : vector<2x128xf32> to vector<2x32xf32>
    %101 = arith.mulf %98, %84 : vector<2x32xf32>
    %102 = arith.mulf %97, %100 : vector<2x32xf32>
    %103 = arith.addf %101, %102 : vector<2x32xf32>
    %104 = math.tanh %103 : vector<2x32xf32>
    %105 = arith.mulf %99, %104 : vector<2x32xf32>
    %c0_62 = arith.constant 0 : index
    %c0_63 = arith.constant 0 : index
    %106 = vector.load %arg13[%c0_62, %c0_63] : memref<2x32xf32, #tpu.memory_space<vmem>>, vector<2x32xf32>
    tpu.vector_store %arg13[%c0_62, %c0_63], %103 {strides = array<i32>} : memref<2x32xf32, #tpu.memory_space<vmem>>, vector<2x32xf32>,
    %c0_64 = arith.constant 0 : index
    %c0_65 = arith.constant 0 : index
    %107 = vector.load %arg12[%c0_64, %c0_65] : memref<2x32xf32, #tpu.memory_space<vmem>>, vector<2x32xf32>
    tpu.vector_store %arg12[%c0_64, %c0_65], %105 {strides = array<i32>} : memref<2x32xf32, #tpu.memory_space<vmem>>, vector<2x32xf32>,
    %108 = arith.index_cast %c2_i32 : i32 to index
    %c0_66 = arith.constant 0 : index
    %c0_67 = arith.constant 0 : index
    %109 = vector.load %arg11[%108, %c0_66, %c0_67] : memref<8x2x32xf32, #tpu.memory_space<vmem>>, vector<1x2x32xf32>
    %110 = vector.shape_cast %109 : vector<1x2x32xf32> to vector<2x32xf32>
    %111 = vector.shape_cast %105 : vector<2x32xf32> to vector<1x2x32xf32>
    tpu.vector_store %arg11[%108, %c0_66, %c0_67], %111 {strides = array<i32>} : memref<8x2x32xf32, #tpu.memory_space<vmem>>, vector<1x2x32xf32>,
    %c3_i32 = arith.constant 3 : i32
    %c0_68 = arith.constant 0 : index
    %c0_69 = arith.constant 0 : index
    %112 = vector.load %arg12[%c0_68, %c0_69] : memref<2x32xf32, #tpu.memory_space<vmem>>, vector<2x32xf32>
    %c0_70 = arith.constant 0 : index
    %c0_71 = arith.constant 0 : index
    %113 = vector.load %arg13[%c0_70, %c0_71] : memref<2x32xf32, #tpu.memory_space<vmem>>, vector<2x32xf32>
    %114 = arith.index_cast %c3_i32 : i32 to index
    %c0_72 = arith.constant 0 : index
    %c0_73 = arith.constant 0 : index
    %115 = vector.load %arg10[%114, %c0_72, %c0_73] : memref<8x2x128xf32, #tpu.memory_space<vmem>>, vector<1x2x128xf32>
    %116 = vector.shape_cast %115 : vector<1x2x128xf32> to vector<2x128xf32>
    %cst_74 = arith.constant dense<0.000000e+00> : vector<2x128xf32>
    %117 = tpu.matmul %112, %15, %cst_74 {dimension_numbers = #tpu.dot_dimension_numbers<[1], [0], [0], [1], [0, 0, 1, 1], [], []>} : vector<2x32xf32>, vector<32x128xf32>, vector<2x128xf32> -> vector<2x128xf32>
    %118 = arith.addf %116, %117 : vector<2x128xf32>
    %119 = arith.negf %118 : vector<2x128xf32>
    %120 = math.exp %119 : vector<2x128xf32>
    %cst_75 = arith.constant 1.000000e+00 : f32
    %121 = vector.broadcast %cst_75 : f32 to vector<2x128xf32>
    %122 = arith.addf %121, %120 : vector<2x128xf32>
    %123 = arith.divf %121, %122 : vector<2x128xf32>
    %124 = math.tanh %118 : vector<2x128xf32>
    %125 = arith.select %24, %123, %124 : vector<2x128xi1>, vector<2x128xf32>
    %126 = vector.extract_strided_slice %125 {offsets = [0, 0], sizes = [2, 32], strides = [1, 1]} : vector<2x128xf32> to vector<2x32xf32>
    %127 = vector.extract_strided_slice %125 {offsets = [0, 32], sizes = [2, 32], strides = [1, 1]} : vector<2x128xf32> to vector<2x32xf32>
    %128 = vector.extract_strided_slice %125 {offsets = [0, 64], sizes = [2, 32], strides = [1, 1]} : vector<2x128xf32> to vector<2x32xf32>
    %129 = vector.extract_strided_slice %125 {offsets = [0, 96], sizes = [2, 32], strides = [1, 1]} : vector<2x128xf32> to vector<2x32xf32>
    %130 = arith.mulf %127, %113 : vector<2x32xf32>
    %131 = arith.mulf %126, %129 : vector<2x32xf32>
    %132 = arith.addf %130, %131 : vector<2x32xf32>
    %133 = math.tanh %132 : vector<2x32xf32>
    %134 = arith.mulf %128, %133 : vector<2x32xf32>
    %c0_76 = arith.constant 0 : index
    %c0_77 = arith.constant 0 : index
    %135 = vector.load %arg13[%c0_76, %c0_77] : memref<2x32xf32, #tpu.memory_space<vmem>>, vector<2x32xf32>
    tpu.vector_store %arg13[%c0_76, %c0_77], %132 {strides = array<i32>} : memref<2x32xf32, #tpu.memory_space<vmem>>, vector<2x32xf32>,
    %c0_78 = arith.constant 0 : index
    %c0_79 = arith.constant 0 : index
    %136 = vector.load %arg12[%c0_78, %c0_79] : memref<2x32xf32, #tpu.memory_space<vmem>>, vector<2x32xf32>
    tpu.vector_store %arg12[%c0_78, %c0_79], %134 {strides = array<i32>} : memref<2x32xf32, #tpu.memory_space<vmem>>, vector<2x32xf32>,
    %137 = arith.index_cast %c3_i32 : i32 to index
    %c0_80 = arith.constant 0 : index
    %c0_81 = arith.constant 0 : index
    %138 = vector.load %arg11[%137, %c0_80, %c0_81] : memref<8x2x32xf32, #tpu.memory_space<vmem>>, vector<1x2x32xf32>
    %139 = vector.shape_cast %138 : vector<1x2x32xf32> to vector<2x32xf32>
    %140 = vector.shape_cast %134 : vector<2x32xf32> to vector<1x2x32xf32>
    tpu.vector_store %arg11[%137, %c0_80, %c0_81], %140 {strides = array<i32>} : memref<8x2x32xf32, #tpu.memory_space<vmem>>, vector<1x2x32xf32>,
    %c4_i32 = arith.constant 4 : i32
    %c0_82 = arith.constant 0 : index
    %c0_83 = arith.constant 0 : index
    %141 = vector.load %arg12[%c0_82, %c0_83] : memref<2x32xf32, #tpu.memory_space<vmem>>, vector<2x32xf32>
    %c0_84 = arith.constant 0 : index
    %c0_85 = arith.constant 0 : index
    %142 = vector.load %arg13[%c0_84, %c0_85] : memref<2x32xf32, #tpu.memory_space<vmem>>, vector<2x32xf32>
    %143 = arith.index_cast %c4_i32 : i32 to index
    %c0_86 = arith.constant 0 : index
    %c0_87 = arith.constant 0 : index
    %144 = vector.load %arg10[%143, %c0_86, %c0_87] : memref<8x2x128xf32, #tpu.memory_space<vmem>>, vector<1x2x128xf32>
    %145 = vector.shape_cast %144 : vector<1x2x128xf32> to vector<2x128xf32>
    %cst_88 = arith.constant dense<0.000000e+00> : vector<2x128xf32>
    %146 = tpu.matmul %141, %15, %cst_88 {dimension_numbers = #tpu.dot_dimension_numbers<[1], [0], [0], [1], [0, 0, 1, 1], [], []>} : vector<2x32xf32>, vector<32x128xf32>, vector<2x128xf32> -> vector<2x128xf32>
    %147 = arith.addf %145, %146 : vector<2x128xf32>
    %148 = arith.negf %147 : vector<2x128xf32>
    %149 = math.exp %148 : vector<2x128xf32>
    %cst_89 = arith.constant 1.000000e+00 : f32
    %150 = vector.broadcast %cst_89 : f32 to vector<2x128xf32>
    %151 = arith.addf %150, %149 : vector<2x128xf32>
    %152 = arith.divf %150, %151 : vector<2x128xf32>
    %153 = math.tanh %147 : vector<2x128xf32>
    %154 = arith.select %24, %152, %153 : vector<2x128xi1>, vector<2x128xf32>
    %155 = vector.extract_strided_slice %154 {offsets = [0, 0], sizes = [2, 32], strides = [1, 1]} : vector<2x128xf32> to vector<2x32xf32>
    %156 = vector.extract_strided_slice %154 {offsets = [0, 32], sizes = [2, 32], strides = [1, 1]} : vector<2x128xf32> to vector<2x32xf32>
    %157 = vector.extract_strided_slice %154 {offsets = [0, 64], sizes = [2, 32], strides = [1, 1]} : vector<2x128xf32> to vector<2x32xf32>
    %158 = vector.extract_strided_slice %154 {offsets = [0, 96], sizes = [2, 32], strides = [1, 1]} : vector<2x128xf32> to vector<2x32xf32>
    %159 = arith.mulf %156, %142 : vector<2x32xf32>
    %160 = arith.mulf %155, %158 : vector<2x32xf32>
    %161 = arith.addf %159, %160 : vector<2x32xf32>
    %162 = math.tanh %161 : vector<2x32xf32>
    %163 = arith.mulf %157, %162 : vector<2x32xf32>
    %c0_90 = arith.constant 0 : index
    %c0_91 = arith.constant 0 : index
    %164 = vector.load %arg13[%c0_90, %c0_91] : memref<2x32xf32, #tpu.memory_space<vmem>>, vector<2x32xf32>
    tpu.vector_store %arg13[%c0_90, %c0_91], %161 {strides = array<i32>} : memref<2x32xf32, #tpu.memory_space<vmem>>, vector<2x32xf32>,
    %c0_92 = arith.constant 0 : index
    %c0_93 = arith.constant 0 : index
    %165 = vector.load %arg12[%c0_92, %c0_93] : memref<2x32xf32, #tpu.memory_space<vmem>>, vector<2x32xf32>
    tpu.vector_store %arg12[%c0_92, %c0_93], %163 {strides = array<i32>} : memref<2x32xf32, #tpu.memory_space<vmem>>, vector<2x32xf32>,
    %166 = arith.index_cast %c4_i32 : i32 to index
    %c0_94 = arith.constant 0 : index
    %c0_95 = arith.constant 0 : index
    %167 = vector.load %arg11[%166, %c0_94, %c0_95] : memref<8x2x32xf32, #tpu.memory_space<vmem>>, vector<1x2x32xf32>
    %168 = vector.shape_cast %167 : vector<1x2x32xf32> to vector<2x32xf32>
    %169 = vector.shape_cast %163 : vector<2x32xf32> to vector<1x2x32xf32>
    tpu.vector_store %arg11[%166, %c0_94, %c0_95], %169 {strides = array<i32>} : memref<8x2x32xf32, #tpu.memory_space<vmem>>, vector<1x2x32xf32>,
    %c5_i32 = arith.constant 5 : i32
    %c0_96 = arith.constant 0 : index
    %c0_97 = arith.constant 0 : index
    %170 = vector.load %arg12[%c0_96, %c0_97] : memref<2x32xf32, #tpu.memory_space<vmem>>, vector<2x32xf32>
    %c0_98 = arith.constant 0 : index
    %c0_99 = arith.constant 0 : index
    %171 = vector.load %arg13[%c0_98, %c0_99] : memref<2x32xf32, #tpu.memory_space<vmem>>, vector<2x32xf32>
    %172 = arith.index_cast %c5_i32 : i32 to index
    %c0_100 = arith.constant 0 : index
    %c0_101 = arith.constant 0 : index
    %173 = vector.load %arg10[%172, %c0_100, %c0_101] : memref<8x2x128xf32, #tpu.memory_space<vmem>>, vector<1x2x128xf32>
    %174 = vector.shape_cast %173 : vector<1x2x128xf32> to vector<2x128xf32>
    %cst_102 = arith.constant dense<0.000000e+00> : vector<2x128xf32>
    %175 = tpu.matmul %170, %15, %cst_102 {dimension_numbers = #tpu.dot_dimension_numbers<[1], [0], [0], [1], [0, 0, 1, 1], [], []>} : vector<2x32xf32>, vector<32x128xf32>, vector<2x128xf32> -> vector<2x128xf32>
    %176 = arith.addf %174, %175 : vector<2x128xf32>
    %177 = arith.negf %176 : vector<2x128xf32>
    %178 = math.exp %177 : vector<2x128xf32>
    %cst_103 = arith.constant 1.000000e+00 : f32
    %179 = vector.broadcast %cst_103 : f32 to vector<2x128xf32>
    %180 = arith.addf %179, %178 : vector<2x128xf32>
    %181 = arith.divf %179, %180 : vector<2x128xf32>
    %182 = math.tanh %176 : vector<2x128xf32>
    %183 = arith.select %24, %181, %182 : vector<2x128xi1>, vector<2x128xf32>
    %184 = vector.extract_strided_slice %183 {offsets = [0, 0], sizes = [2, 32], strides = [1, 1]} : vector<2x128xf32> to vector<2x32xf32>
    %185 = vector.extract_strided_slice %183 {offsets = [0, 32], sizes = [2, 32], strides = [1, 1]} : vector<2x128xf32> to vector<2x32xf32>
    %186 = vector.extract_strided_slice %183 {offsets = [0, 64], sizes = [2, 32], strides = [1, 1]} : vector<2x128xf32> to vector<2x32xf32>
    %187 = vector.extract_strided_slice %183 {offsets = [0, 96], sizes = [2, 32], strides = [1, 1]} : vector<2x128xf32> to vector<2x32xf32>
    %188 = arith.mulf %185, %171 : vector<2x32xf32>
    %189 = arith.mulf %184, %187 : vector<2x32xf32>
    %190 = arith.addf %188, %189 : vector<2x32xf32>
    %191 = math.tanh %190 : vector<2x32xf32>
    %192 = arith.mulf %186, %191 : vector<2x32xf32>
    %c0_104 = arith.constant 0 : index
    %c0_105 = arith.constant 0 : index
    %193 = vector.load %arg13[%c0_104, %c0_105] : memref<2x32xf32, #tpu.memory_space<vmem>>, vector<2x32xf32>
    tpu.vector_store %arg13[%c0_104, %c0_105], %190 {strides = array<i32>} : memref<2x32xf32, #tpu.memory_space<vmem>>, vector<2x32xf32>,
    %c0_106 = arith.constant 0 : index
    %c0_107 = arith.constant 0 : index
    %194 = vector.load %arg12[%c0_106, %c0_107] : memref<2x32xf32, #tpu.memory_space<vmem>>, vector<2x32xf32>
    tpu.vector_store %arg12[%c0_106, %c0_107], %192 {strides = array<i32>} : memref<2x32xf32, #tpu.memory_space<vmem>>, vector<2x32xf32>,
    %195 = arith.index_cast %c5_i32 : i32 to index
    %c0_108 = arith.constant 0 : index
    %c0_109 = arith.constant 0 : index
    %196 = vector.load %arg11[%195, %c0_108, %c0_109] : memref<8x2x32xf32, #tpu.memory_space<vmem>>, vector<1x2x32xf32>
    %197 = vector.shape_cast %196 : vector<1x2x32xf32> to vector<2x32xf32>
    %198 = vector.shape_cast %192 : vector<2x32xf32> to vector<1x2x32xf32>
    tpu.vector_store %arg11[%195, %c0_108, %c0_109], %198 {strides = array<i32>} : memref<8x2x32xf32, #tpu.memory_space<vmem>>, vector<1x2x32xf32>,
    %c6_i32 = arith.constant 6 : i32
    %c0_110 = arith.constant 0 : index
    %c0_111 = arith.constant 0 : index
    %199 = vector.load %arg12[%c0_110, %c0_111] : memref<2x32xf32, #tpu.memory_space<vmem>>, vector<2x32xf32>
    %c0_112 = arith.constant 0 : index
    %c0_113 = arith.constant 0 : index
    %200 = vector.load %arg13[%c0_112, %c0_113] : memref<2x32xf32, #tpu.memory_space<vmem>>, vector<2x32xf32>
    %201 = arith.index_cast %c6_i32 : i32 to index
    %c0_114 = arith.constant 0 : index
    %c0_115 = arith.constant 0 : index
    %202 = vector.load %arg10[%201, %c0_114, %c0_115] : memref<8x2x128xf32, #tpu.memory_space<vmem>>, vector<1x2x128xf32>
    %203 = vector.shape_cast %202 : vector<1x2x128xf32> to vector<2x128xf32>
    %cst_116 = arith.constant dense<0.000000e+00> : vector<2x128xf32>
    %204 = tpu.matmul %199, %15, %cst_116 {dimension_numbers = #tpu.dot_dimension_numbers<[1], [0], [0], [1], [0, 0, 1, 1], [], []>} : vector<2x32xf32>, vector<32x128xf32>, vector<2x128xf32> -> vector<2x128xf32>
    %205 = arith.addf %203, %204 : vector<2x128xf32>
    %206 = arith.negf %205 : vector<2x128xf32>
    %207 = math.exp %206 : vector<2x128xf32>
    %cst_117 = arith.constant 1.000000e+00 : f32
    %208 = vector.broadcast %cst_117 : f32 to vector<2x128xf32>
    %209 = arith.addf %208, %207 : vector<2x128xf32>
    %210 = arith.divf %208, %209 : vector<2x128xf32>
    %211 = math.tanh %205 : vector<2x128xf32>
    %212 = arith.select %24, %210, %211 : vector<2x128xi1>, vector<2x128xf32>
    %213 = vector.extract_strided_slice %212 {offsets = [0, 0], sizes = [2, 32], strides = [1, 1]} : vector<2x128xf32> to vector<2x32xf32>
    %214 = vector.extract_strided_slice %212 {offsets = [0, 32], sizes = [2, 32], strides = [1, 1]} : vector<2x128xf32> to vector<2x32xf32>
    %215 = vector.extract_strided_slice %212 {offsets = [0, 64], sizes = [2, 32], strides = [1, 1]} : vector<2x128xf32> to vector<2x32xf32>
    %216 = vector.extract_strided_slice %212 {offsets = [0, 96], sizes = [2, 32], strides = [1, 1]} : vector<2x128xf32> to vector<2x32xf32>
    %217 = arith.mulf %214, %200 : vector<2x32xf32>
    %218 = arith.mulf %213, %216 : vector<2x32xf32>
    %219 = arith.addf %217, %218 : vector<2x32xf32>
    %220 = math.tanh %219 : vector<2x32xf32>
    %221 = arith.mulf %215, %220 : vector<2x32xf32>
    %c0_118 = arith.constant 0 : index
    %c0_119 = arith.constant 0 : index
    %222 = vector.load %arg13[%c0_118, %c0_119] : memref<2x32xf32, #tpu.memory_space<vmem>>, vector<2x32xf32>
    tpu.vector_store %arg13[%c0_118, %c0_119], %219 {strides = array<i32>} : memref<2x32xf32, #tpu.memory_space<vmem>>, vector<2x32xf32>,
    %c0_120 = arith.constant 0 : index
    %c0_121 = arith.constant 0 : index
    %223 = vector.load %arg12[%c0_120, %c0_121] : memref<2x32xf32, #tpu.memory_space<vmem>>, vector<2x32xf32>
    tpu.vector_store %arg12[%c0_120, %c0_121], %221 {strides = array<i32>} : memref<2x32xf32, #tpu.memory_space<vmem>>, vector<2x32xf32>,
    %224 = arith.index_cast %c6_i32 : i32 to index
    %c0_122 = arith.constant 0 : index
    %c0_123 = arith.constant 0 : index
    %225 = vector.load %arg11[%224, %c0_122, %c0_123] : memref<8x2x32xf32, #tpu.memory_space<vmem>>, vector<1x2x32xf32>
    %226 = vector.shape_cast %225 : vector<1x2x32xf32> to vector<2x32xf32>
    %227 = vector.shape_cast %221 : vector<2x32xf32> to vector<1x2x32xf32>
    tpu.vector_store %arg11[%224, %c0_122, %c0_123], %227 {strides = array<i32>} : memref<8x2x32xf32, #tpu.memory_space<vmem>>, vector<1x2x32xf32>,
    %c7_i32 = arith.constant 7 : i32
    %c0_124 = arith.constant 0 : index
    %c0_125 = arith.constant 0 : index
    %228 = vector.load %arg12[%c0_124, %c0_125] : memref<2x32xf32, #tpu.memory_space<vmem>>, vector<2x32xf32>
    %c0_126 = arith.constant 0 : index
    %c0_127 = arith.constant 0 : index
    %229 = vector.load %arg13[%c0_126, %c0_127] : memref<2x32xf32, #tpu.memory_space<vmem>>, vector<2x32xf32>
    %230 = arith.index_cast %c7_i32 : i32 to index
    %c0_128 = arith.constant 0 : index
    %c0_129 = arith.constant 0 : index
    %231 = vector.load %arg10[%230, %c0_128, %c0_129] : memref<8x2x128xf32, #tpu.memory_space<vmem>>, vector<1x2x128xf32>
    %232 = vector.shape_cast %231 : vector<1x2x128xf32> to vector<2x128xf32>
    %cst_130 = arith.constant dense<0.000000e+00> : vector<2x128xf32>
    %233 = tpu.matmul %228, %15, %cst_130 {dimension_numbers = #tpu.dot_dimension_numbers<[1], [0], [0], [1], [0, 0, 1, 1], [], []>} : vector<2x32xf32>, vector<32x128xf32>, vector<2x128xf32> -> vector<2x128xf32>
    %234 = arith.addf %232, %233 : vector<2x128xf32>
    %235 = arith.negf %234 : vector<2x128xf32>
    %236 = math.exp %235 : vector<2x128xf32>
    %cst_131 = arith.constant 1.000000e+00 : f32
    %237 = vector.broadcast %cst_131 : f32 to vector<2x128xf32>
    %238 = arith.addf %237, %236 : vector<2x128xf32>
    %239 = arith.divf %237, %238 : vector<2x128xf32>
    %240 = math.tanh %234 : vector<2x128xf32>
    %241 = arith.select %24, %239, %240 : vector<2x128xi1>, vector<2x128xf32>
    %242 = vector.extract_strided_slice %241 {offsets = [0, 0], sizes = [2, 32], strides = [1, 1]} : vector<2x128xf32> to vector<2x32xf32>
    %243 = vector.extract_strided_slice %241 {offsets = [0, 32], sizes = [2, 32], strides = [1, 1]} : vector<2x128xf32> to vector<2x32xf32>
    %244 = vector.extract_strided_slice %241 {offsets = [0, 64], sizes = [2, 32], strides = [1, 1]} : vector<2x128xf32> to vector<2x32xf32>
    %245 = vector.extract_strided_slice %241 {offsets = [0, 96], sizes = [2, 32], strides = [1, 1]} : vector<2x128xf32> to vector<2x32xf32>
    %246 = arith.mulf %243, %229 : vector<2x32xf32>
    %247 = arith.mulf %242, %245 : vector<2x32xf32>
    %248 = arith.addf %246, %247 : vector<2x32xf32>
    %249 = math.tanh %248 : vector<2x32xf32>
    %250 = arith.mulf %244, %249 : vector<2x32xf32>
    %c0_132 = arith.constant 0 : index
    %c0_133 = arith.constant 0 : index
    %251 = vector.load %arg13[%c0_132, %c0_133] : memref<2x32xf32, #tpu.memory_space<vmem>>, vector<2x32xf32>
    tpu.vector_store %arg13[%c0_132, %c0_133], %248 {strides = array<i32>} : memref<2x32xf32, #tpu.memory_space<vmem>>, vector<2x32xf32>,
    %c0_134 = arith.constant 0 : index
    %c0_135 = arith.constant 0 : index
    %252 = vector.load %arg12[%c0_134, %c0_135] : memref<2x32xf32, #tpu.memory_space<vmem>>, vector<2x32xf32>
    tpu.vector_store %arg12[%c0_134, %c0_135], %250 {strides = array<i32>} : memref<2x32xf32, #tpu.memory_space<vmem>>, vector<2x32xf32>,
    %253 = arith.index_cast %c7_i32 : i32 to index
    %c0_136 = arith.constant 0 : index
    %c0_137 = arith.constant 0 : index
    %254 = vector.load %arg11[%253, %c0_136, %c0_137] : memref<8x2x32xf32, #tpu.memory_space<vmem>>, vector<1x2x32xf32>
    %255 = vector.shape_cast %254 : vector<1x2x32xf32> to vector<2x32xf32>
    %256 = vector.shape_cast %250 : vector<2x32xf32> to vector<1x2x32xf32>
    tpu.vector_store %arg11[%253, %c0_136, %c0_137], %256 {strides = array<i32>} : memref<8x2x32xf32, #tpu.memory_space<vmem>>, vector<1x2x32xf32>,
    %c8_i32 = arith.constant 8 : i32
    %c0_138 = arith.constant 0 : index
    %c0_139 = arith.constant 0 : index
    %257 = vector.load %arg12[%c0_138, %c0_139] : memref<2x32xf32, #tpu.memory_space<vmem>>, vector<2x32xf32>
    %c0_140 = arith.constant 0 : index
    %c0_141 = arith.constant 0 : index
    %c0_142 = arith.constant 0 : index
    %258 = vector.load %arg8[%c0_140, %c0_141, %c0_142] : memref<1x2x32xf32, #tpu.memory_space<vmem>>, vector<1x2x32xf32>
    %259 = vector.shape_cast %258 : vector<1x2x32xf32> to vector<2x32xf32>
    %260 = vector.shape_cast %257 : vector<2x32xf32> to vector<1x2x32xf32>
    tpu.vector_store %arg8[%c0_140, %c0_141, %c0_142], %260 {strides = array<i32>} : memref<1x2x32xf32, #tpu.memory_space<vmem>>, vector<1x2x32xf32>,
    %c0_143 = arith.constant 0 : index
    %c0_144 = arith.constant 0 : index
    %261 = vector.load %arg13[%c0_143, %c0_144] : memref<2x32xf32, #tpu.memory_space<vmem>>, vector<2x32xf32>
    %c0_145 = arith.constant 0 : index
    %c0_146 = arith.constant 0 : index
    %c0_147 = arith.constant 0 : index
    %262 = vector.load %arg9[%c0_145, %c0_146, %c0_147] : memref<1x2x32xf32, #tpu.memory_space<vmem>>, vector<1x2x32xf32>
    %263 = vector.shape_cast %262 : vector<1x2x32xf32> to vector<2x32xf32>
    %264 = vector.shape_cast %261 : vector<2x32xf32> to vector<1x2x32xf32>
    tpu.vector_store %arg9[%c0_145, %c0_146, %c0_147], %264 {strides = array<i32>} : memref<1x2x32xf32, #tpu.memory_space<vmem>>, vector<1x2x32xf32>,
    %c1_i32_148 = arith.constant 1 : i32
    %265 = arith.cmpi eq, %arg0, %c1_i32_148 : i32
    %266 = arith.extui %265 : i1 to i32
    %c0_i32_149 = arith.constant 0 : i32
    %267 = arith.cmpi ne, %266, %c0_i32_149 : i32
    scf.if %267 {
      %c0_150 = arith.constant 0 : index
      %c0_151 = arith.constant 0 : index
      %c0_152 = arith.constant 0 : index
      %268 = vector.load %arg11[%c0_150, %c0_151, %c0_152] : memref<8x2x32xf32, #tpu.memory_space<vmem>>, vector<8x2x32xf32>
      %c0_153 = arith.constant 0 : index
      %c0_154 = arith.constant 0 : index
      %c0_155 = arith.constant 0 : index
      %269 = vector.load %arg7[%c0_153, %c0_154, %c0_155] : memref<8x2x32xf32, #tpu.memory_space<vmem>>, vector<8x2x32xf32>
      tpu.vector_store %arg7[%c0_153, %c0_154, %c0_155], %268 {strides = array<i32>} : memref<8x2x32xf32, #tpu.memory_space<vmem>>, vector<8x2x32xf32>,
    } else {
    }
    return
  }
  func.func @transform_0(%arg0: i32) -> (i32, i32, i32) {
    %c0_i32 = arith.constant 0 : i32
    %c0_i32_0 = arith.constant 0 : i32
    %c0_i32_1 = arith.constant 0 : i32
    %c0_i32_2 = arith.constant 0 : i32
    return %c0_i32, %c0_i32_0, %c0_i32_1 : i32, i32, i32
  }
  func.func @transform_1(%arg0: i32) -> (i32, i32, i32) {
    %c0_i32 = arith.constant 0 : i32
    %c0_i32_0 = arith.constant 0 : i32
    %c0_i32_1 = arith.constant 0 : i32
    return %arg0, %c0_i32, %c0_i32_0 : i32, i32, i32
  }
  func.func @transform_2(%arg0: i32) -> (i32, i32, i32) {
    %c0_i32 = arith.constant 0 : i32
    %c0_i32_0 = arith.constant 0 : i32
    %c0_i32_1 = arith.constant 0 : i32
    return %arg0, %c0_i32, %c0_i32_0 : i32, i32, i32
  }
  func.func @transform_3(%arg0: i32) -> (i32, i32, i32) {
    %c0_i32 = arith.constant 0 : i32
    %c0_i32_0 = arith.constant 0 : i32
    %c0_i32_1 = arith.constant 0 : i32
    return %arg0, %c0_i32, %c0_i32_0 : i32, i32, i32
  }
  func.func @transform_4(%arg0: i32) -> (i32, i32, i32) {
    %c0_i32 = arith.constant 0 : i32
    %c0_i32_0 = arith.constant 0 : i32
    %c0_i32_1 = arith.constant 0 : i32
    return %arg0, %c0_i32, %c0_i32_0 : i32, i32, i32
  }
  func.func @transform_5(%arg0: i32) -> (i32, i32, i32) {
    %c0_i32 = arith.constant 0 : i32
    %c0_i32_0 = arith.constant 0 : i32
    %c0_i32_1 = arith.constant 0 : i32
    return %arg0, %c0_i32, %c0_i32_0 : i32, i32, i32
  }
  func.func @transform_6(%arg0: i32) -> (i32, i32, i32) {
    %c0_i32 = arith.constant 0 : i32
    %c0_i32_0 = arith.constant 0 : i32
    %c0_i32_1 = arith.constant 0 : i32
    %c0_i32_2 = arith.constant 0 : i32
    return %c0_i32, %c0_i32_0, %c0_i32_1 : i32, i32, i32
  }
  func.func @transform_7(%arg0: i32) -> (i32, i32, i32) {
    %c0_i32 = arith.constant 0 : i32
    %c0_i32_0 = arith.constant 0 : i32
    %c0_i32_1 = arith.constant 0 : i32
    return %arg0, %c0_i32, %c0_i32_0 : i32, i32, i32
  }
  func.func @transform_8(%arg0: i32) -> (i32, i32, i32) {
    %c0_i32 = arith.constant 0 : i32
    %c0_i32_0 = arith.constant 0 : i32
    %c0_i32_1 = arith.constant 0 : i32
    return %arg0, %c0_i32, %c0_i32_0 : i32, i32, i32
  }
}

</mosaic_0001>

<bundles_post_ra>
// kernel: decoder_lstm_forward.1
= control target key start
LH: loop header
LB: loop body
LE: loop exit
PB: predicated region body
PF: predicated region fallthrough
CT: control target
= control target key end

     0   :  { %s2206_s0 = inlined_call_operand.vmem [shape: f32[8,2,32], index: 0, kind: input, shape index: {}]   ;;  %s2207_s1 = inlined_call_operand.hbm [shape: f32[2,32,128], index: 1, kind: input, shape index: {}]   ;;  %s2208_s2 = inlined_call_operand.hbm [shape: f32[2,32,128], index: 2, kind: input, shape index: {}]   ;;  %s2209_s3 = inlined_call_operand.vmem [shape: f32[2,1,128], index: 3, kind: input, shape index: {}]   ;;  %s2210_s4 = inlined_call_operand.vmem [shape: f32[2,2,32], index: 4, kind: input, shape index: {}]   ;;  %s2211_s5 = inlined_call_operand.vmem [shape: f32[2,2,32], index: 5, kind: input, shape index: {}]   ;;  %s2212_s6 = inlined_call_operand.vmem [shape: f32[8,2,32], index: 6, kind: output, shape index: {0}]   ;;  %s2213_s7 = inlined_call_operand.hbm [shape: f32[2,2,32], index: 7, kind: output, shape index: {1}]   ;;  %s2214_s8 = inlined_call_operand.hbm [shape: f32[2,2,32], index: 8, kind: output, shape index: {2}]  }
   0x1   :  { %2222 = sst [smem:[#allocation23_spill]] %s2207_s1 }
   0x2   :  { %14 = vsyncpa [#allocation7], 0 }
   0x3   :  { %16 = vsyncpa [#allocation7 + $0x1], 0 }
   0x4   :  { %17 = vsyncpa [#allocation10], 0 }
   0x5   :  { %19 = vsyncpa [#allocation10 + $0x1], 0 }
   0x6   :  { %20 = vsyncpa [#allocation8], 0 }
   0x7   :  { %22 = vsyncpa [#allocation8 + $0x1], 0 }
   0x8   :  { %23 = vsyncpa [#allocation13], 0 }
   0x9   :  { %25 = vsyncpa [#allocation13 + $0x1], 0  ;;  %s1810_s27 = smov 0   ;;  %s1812_s28 = smov 0  }
   0xa   :  { %s1814_s29 = smov 0   ;;  %s1816_s30 = smov 0  }
   0xb LB: > { %2223 = sst [smem:[#allocation18_spill]] %s1746_s27  ;;  %s1831_s9 = sadd.s32 4294967295, %s1758_s30   ;;  %s1758_s30 = sphi %s1816_s30, %s2240_s30   ;;  %s1754_s29 = sphi %s1814_s29, %s2242_s29   ;;  %s1750_s28 = sphi %s1812_s28, %s2244_s28   ;;  %s1746_s27 = sphi %s1810_s27, %s2243_s27  }
   0xc   : > { %2224 = sst [smem:[#allocation19_spill]] %s1754_s29  ;;  %s1426_s10 = sadd.s32 4294967294, %s1758_s30  }
   0xd   : > { %s1835_s11 = sadd.s32 1, %s1758_s30   ;;  %s59_s12 = sadd.s32 1, %s1754_s29 }
   0xe   : > { %2225 = sst [smem:[#allocation20_spill]] %s1835_s11  ;;  %s56_s13 = ssub.s32 %s1758_s30, %s1835_s11 }
   0xf   : > { %p66_p0 = scmp.ne.s32.totalorder %s1754_s29, %s1750_s28  ;;  %p57_p1 = scmp.eq.s32.totalorder %s56_s13, 0 }
  0x10   : > { %p67_p2 = scmp.eq.s32.totalorder %s1758_s30, 0  ;;  %p72_p3 = scmp.ne.s32.totalorder %s1750_s28, %s1746_s27 }
  0x11   : > { %p73_p4 = scmp.eq.s32.totalorder %s1831_s9, 0  ;;  %p221_p7 = scmp.eq.s32.totalorder %s1831_s9, 1 }
  0x12   : > { %s1847_s14 = scalar_select %p57_p1, %s1754_s29, %s59_s12  }
  0x13   : > { %p1849_p5 = por %p67_p2, %p66_p0  ;;  %p1853_p6 = por %p73_p4, %p72_p3 }
  0x14   : > { %2226 = sst [smem:[#allocation21_spill]] %s1847_s14  ;;  %p227_p8 = scmp.eq.s32.totalorder %s1426_s10, 1 }
  0x15   : > { %p1492_p10 = scmp.lt.s32.totalorder %s1758_s30, 2  ;;  %p1860_p11 = por %p221_p7, %p66_p0 }
  0x16   : > { %p1864_p12 = por %p227_p8, %p72_p3  ;;  %s1869_s19 = sand.u32 1, %s1754_s29  }
  0x17   : > { %s2216_s20 = sshll.u32 %s1758_s30, 5  ;;  %s2215_s21 = sshll.u32 %s1869_s19, 5 }
  0x18   : > { %s2230_s18 = scalar_select %p1864_p12, 1, 0 }
  0x19   : > { %s2232_s1 = sld [smem:[#allocation23_spill]]  ;;  %s280_s26 = scalar_lea.vmem [#allocation6], %s2215_s21 }
  0x1a   : > { %2231 = sst [smem:[#allocation22_spill]] %s2230_s18  ;;  %s288_s10 = sshll.u32 %s280_s26, 4  ;;  %s289_s10 = int_to_ptr.vmem [resolvable:$true] %s288_s10 }
  0x1b   : > { %p1882_p13 = pnand %p1492_p10, %p1849_p5  ;;  %p1435_p0 = scmp.ge.s32.totalorder %s1758_s30, 1 }
  0x1c   : > { %p338_p1 = scmp.lt.s32.totalorder %s1758_s30, 3  ;;  %s277_s13 = scalar_lea.sflag [#allocation7], %s1869_s19 }
  0x1d   : > { %p1600_p3 = pneg %p1882_p13 }
  0x1f   : > { %s285_s24 = scalar_lea.hbm %s2232_s1, %s2216_s20 }
  0x20   : > { %s286_s25 = sshll.u32 %s285_s24, 4  ;;  %s1603_s24 = scalar_lea.hbm %s2232_s1, 64  ;;  %s287_s25 = int_to_ptr.hbm [resolvable:$true] %s286_s25 }
  0x21   : > { %s1596_s14 = sshra.s32 %s287_s25, 4  ;;  %s1597_s14 = int_to_ptr.hbm [resolvable:$true] %s1596_s14 }
  0x22   : > { %s1598_s22 = scalar_lea.hbm %s1597_s14, 32  ;;  %p1604_p5 = scmp.lt.s32.totalorder %s1597_s14, %s2232_s1 }
  0x23   : > { %p1599_p2 = scmp.ne.s32.totalorder %s1597_s14, %s1598_s22  ;;  %p1605_p8 = scmp.lt.s32.totalorder %s1603_s24, %s1598_s22 }
  0x25   : > { %p1601_p4 = pnand %p1600_p3, %p1599_p2  ;;  %p1606_p10 = por %p1605_p8, %p1604_p5 }
  0x27   : > { %p1602_p7 = pneg %p1601_p4 }
  0x29   : > { %p1607_p9 = pnand %p1606_p10, %p1602_p7 }
  0x2b   : > { %1610 = shalt.err (!%p1607_p9)
}
  0x2c   : > { %s1760_s20 = smov 128   ;;  %s1761_s29 = smov 8  }
  0x2d   : > { %1481 = dma.hbm_to_vmem [thread:$0]  (!%p1882_p13), %s287_s25, 512, %s289_s10, %s277_s13, %s1760_s20, %s1760_s20, %s1761_s29  }
  0x2e   : > { %p1906_p2 = pnand %p1435_p0, %p338_p1  ;;  %s2235_s14 = sshll.u32 %s1758_s30, 5 }
  0x2f   : > { %s307_s23 = scalar_lea.hbm %s2208_s2, %s2235_s14  ;;  %s2236_s26 = sshll.u32 %s1869_s19, 5 }
  0x30   : > { %s308_s24 = sshll.u32 %s307_s23, 4  ;;  %s302_s1 = scalar_lea.vmem [#allocation9], %s2236_s26  ;;  %s309_s24 = int_to_ptr.hbm [resolvable:$true] %s308_s24 }
  0x31   : > { %s310_s11 = sshll.u32 %s302_s1, 4  ;;  %s299_s18 = scalar_lea.sflag [#allocation10], %s1869_s19  ;;  %s311_s11 = int_to_ptr.vmem [resolvable:$true] %s310_s11 }
  0x32   : > { %s1626_s27 = sshra.s32 %s309_s24, 4  ;;  %s1633_s22 = scalar_lea.hbm %s2208_s2, 64  ;;  %s1627_s27 = int_to_ptr.hbm [resolvable:$true] %s1626_s27 }
  0x33   : > { %s1628_s25 = scalar_lea.hbm %s1627_s27, 32  ;;  %p1634_p4 = scmp.lt.s32.totalorder %s1627_s27, %s2208_s2 }
  0x34   : > { %p1629_p9 = scmp.ne.s32.totalorder %s1627_s27, %s1628_s25  ;;  %p1635_p7 = scmp.lt.s32.totalorder %s1633_s22, %s1628_s25 }
  0x36   : > { %p1631_p0 = pnand %p1629_p9, %p1600_p3  ;;  %p1636_p5 = por %p1635_p7, %p1634_p4 }
  0x38   : > { %p1632_p1 = pneg %p1631_p0 }
  0x3a   : > { %p1637_p8 = pnand %p1636_p5, %p1632_p1 }
  0x3c   : > { %1640 = shalt.err (!%p1637_p8)
}
  0x3d   : > { %1484 = dma.hbm_to_vmem [thread:$0]  (!%p1882_p13), %s309_s24, 512, %s311_s11, %s299_s18, %s1760_s20, %s1760_s20, %s1761_s29  }
  0x3e   : > { %342 = sbr.rel (%p1906_p2) target bundleno = 5064 (0x13c8), region = 44  ;;  %s1932_s1 = sand.u32 (!%p1906_p2), 1, %s1750_s28  }
  0x3f   : > { %s1436_s19 = sshll.u32 (!%p1906_p2), %s1932_s1, 5  ;;  %s345_s23 = scalar_lea.sflag (!%p1906_p2), [#allocation7], %s1932_s1 }
  0x40   : > { %s1936_s26 = scalar_lea.vmem (!%p1906_p2), [#allocation6], %s1436_s19 }
  0x43   : > { %1729 = dma.done.wait (%p1853_p6), %s345_s23, 512  }
  0x44   : > { %1731 = vsyncadd (%p1853_p6), %s345_s23, 4294966784  ;;  %s355_s27 = scalar_lea.sflag [#allocation10], %s1932_s1  ;;  %s1943_s29 = scalar_lea.vmem [#allocation9], %s1436_s19 }
  0x45   : > { %1733 = dma.done.wait (%p1853_p6), %s355_s27, 512  }
  0x46   : > { %1735 = vsyncadd (%p1853_p6), %s355_s27, 4294966784  ;;  %s1438_s11 = sshll.u32 %s1932_s1, 1  ;;  %p413_p13 = scmp.lt.s32.totalorder %s1831_s9, 1 }
  0x47   : > { %s1969_s15 = scalar_lea.vmem [#allocation11], %s1438_s11  ;;  %s1971_s19 = scalar_lea.vmem [#allocation12], %s1438_s11 }
  0x48   : > { %s1952_s18 = scalar_select %p413_p13, %s1831_s9, 1 }
  0x49   : > { %p1442_p6 = scmp.ne.s32.totalorder %s1831_s9, 0 }
  0x4a   : > { %s415_s21 = scalar_lea.vmem %s2209_s3, %s1952_s18  ;;  %s1440_s24 = sshll.u32 %s1952_s18, 1 }
  0x4b   : > { %s1962_s13 = scalar_lea.vmem %s2210_s4, %s1440_s24  ;;  %s1967_s14 = scalar_lea.vmem %s2211_s5, %s1440_s24 }
  0x4c   : > { %427 = sbr.rel (%p1442_p6) target bundleno = 90 (0x5a), region = 56 }
  0x51   : > { %v428_v0 = vld [vmem:[%s2206_s0] sm:$0x3]  ;;  %vm436_vm0 = vcmask 254976   ;;  %v429_v1 = vld [vmem:[%s2206_s0 + $0x2] sm:$0x3] }
  0x52   : > { %437 = vst.msk [vmem:[#allocation3] sm:$0x3] %vm436_vm0, %v428_v0  ;;  %v430_v2 = vld [vmem:[%s2206_s0 + $0x4] sm:$0x3]  ;;  %v431_v3 = vld [vmem:[%s2206_s0 + $0x6] sm:$0x3] }
  0x53   : > { %438 = vst.msk [vmem:[#allocation3 + $0x2] sm:$0x3] %vm436_vm0, %v429_v1  ;;  %v432_v4 = vld [vmem:[%s2206_s0 + $0x8] sm:$0x3]  ;;  %v433_v5 = vld [vmem:[%s2206_s0 + $0xa] sm:$0x3] }
  0x54   : > { %439 = vst.msk [vmem:[#allocation3 + $0x4] sm:$0x3] %vm436_vm0, %v430_v2  ;;  %v434_v6 = vld [vmem:[%s2206_s0 + $0xc] sm:$0x3]  ;;  %v435_v7 = vld [vmem:[%s2206_s0 + $0xe] sm:$0x3] }
  0x55   : > { %440 = vst.msk [vmem:[#allocation3 + $0x6] sm:$0x3] %vm436_vm0, %v431_v3 }
  0x56   : > { %441 = vst.msk [vmem:[#allocation3 + $0x8] sm:$0x3] %vm436_vm0, %v432_v4 }
  0x57   : > { %442 = vst.msk [vmem:[#allocation3 + $0xa] sm:$0x3] %vm436_vm0, %v433_v5 }
  0x58   : > { %443 = vst.msk [vmem:[#allocation3 + $0xc] sm:$0x3] %vm436_vm0, %v434_v6 }
  0x59   : > { %444 = vst.msk [vmem:[#allocation3 + $0xe] sm:$0x3] %vm436_vm0, %v435_v7 }
  0x5a PF: > { %v448_v8 = vld [vmem:[%s1936_s26 + $0x18] sm:$0xff]  ;;  %v447_v9 = vld [vmem:[%s1936_s26 + $0x10] sm:$0xff]  ;;  %v446_v10 = vld [vmem:[%s1936_s26 + $0x8] sm:$0xff]  ;;  %vm541_vm1 = vcmask 254976   ;;  %vm486_vm2 = vcmask 261120   ;;  %v545_v37 = vlaneseq  ;;  %s1762_s18 = smov 32  }
  0x5b   : > { %503 = vmatpush.msra.mxu0 %v448_v8  ;;  %v450_v11 = vld [vmem:[#allocation3] sm:$0x3]  ;;  %v451_v12 = vld [vmem:[#allocation3 + $0x2] sm:$0x3]  ;;  %v452_v13 = vld [vmem:[#allocation3 + $0x4] sm:$0x3] }
  0x5c   : > { %v453_v14 = vld [vmem:[#allocation3 + $0x6] sm:$0x3]  ;;  %469 = vst [vmem:[#allocation1] ss:$4 sm:$0xff] %v450_v11  ;;  %v539_v15 = vld [vmem:[%s1943_s29 + $0x18] sm:$0xff]  ;;  %v445_v17 = vld [vmem:[%s1936_s26] sm:$0xff] }
  0x5d   : > { %504 = vmatpush.msra.mxu0 %v447_v9  ;;  %471 = vst [vmem:[#allocation1 + $0x1] ss:$4 sm:$0xff] %v451_v12  ;;  %v538_v16 = vld [vmem:[%s1943_s29 + $0x10] sm:$0xff]  ;;  %566 = vmatpush.msra.mxu1 %v539_v15  ;;  %v537_v19 = vld [vmem:[%s1943_s29 + $0x8] sm:$0xff]  ;;  %v536_v20 = vld [vmem:[%s1943_s29] sm:$0xff]  ;;  %v2020_v40 = vand.u32 127, %v545_v37 }
  0x5e   : > { %473 = vst [vmem:[#allocation1 + $0x2] ss:$4 sm:$0xff] %v452_v13  ;;  %v540_v18 = vld [vmem:[%s1962_s13] sm:$0x3]  ;;  %647 = vmatpush.msra.mxu2 %v539_v15  ;;  %729 = vmatpush.msra.mxu3 %v539_v15  ;;  %s1764_s13 = smov 96   ;;  %p1461_p3 = scmp.ne.s32.totalorder %s1831_s9, 1 }
  0x5f   : > { %505 = vmatpush.msra.mxu0 %v446_v10  ;;  %475 = vst [vmem:[#allocation1 + $0x3] ss:$4 sm:$0xff] %v453_v14  ;;  %567 = vmatpush.msra.mxu1 %v538_v16  ;;  %v2015_v23 = vld [vmem:[%s415_s21] ss:$0 sm:$0xff]  ;;  %vm547_vm5 = vcmp.lt.s32.totalorder %v2020_v40, 96  ;;  %s1763_s21 = smov 64  }
  0x60   : > { %542 = vst.msk [vmem:[#allocation4] sm:$0x3] %vm541_vm1, %v540_v18  ;;  %648 = vmatpush.msra.mxu2 %v538_v16  ;;  %730 = vmatpush.msra.mxu3 %v538_v16  ;;  %v543_v31 = vld [vmem:[%s1967_s14] sm:$0x3] }
  0x61   : > { %506 = vmatpush.msra.mxu0 %v445_v17  ;;  %568 = vmatpush.msra.mxu1 %v537_v19  ;;  %544 = vst.msk [vmem:[#allocation5] sm:$0x3] %vm541_vm1, %v543_v31 }
  0x62   : > { %649 = vmatpush.msra.mxu2 %v537_v19  ;;  %731 = vmatpush.msra.mxu3 %v537_v19 }
  0x63   : > { %1057 = vmatpush.msrb.mxu0 %v539_v15  ;;  %569 = vmatpush.msra.mxu1 %v536_v20 }
  0x64   : > { %650 = vmatpush.msra.mxu2 %v536_v20  ;;  %732 = vmatpush.msra.mxu3 %v536_v20 }
  0x65   : > { %811 = vmatpush.msrb.mxu1 %v539_v15  ;;  %1058 = vmatpush.msrb.mxu0 %v538_v16 }
  0x66   : > { %v484_v21 = vld.sshfl [vmem:[#allocation1] sm:$0xff pattern:$0x73625140]  ;;  %893 = vmatpush.msrb.mxu2 %v539_v15  ;;  %975 = vmatpush.msrb.mxu3 %v539_v15 }
  0x67   : > { %1443 = vmatmul.msk.f32.vlgmr.msra.gmra.mxu0 %vm486_vm2, %v484_v21  ;;  %v548_v22 = vld [vmem:[#allocation4] sm:$0x3]  ;;  %812 = vmatpush.msrb.mxu1 %v538_v16 }
  0x68   : > { %1445 = vmatmul.msk.f32.vlgmr.msra.gmra.mxu1 %vm486_vm2, %v548_v22  ;;  %894 = vmatpush.msrb.mxu2 %v538_v16  ;;  %v549_v50 = vld [vmem:[#allocation5] sm:$0x3] }
  0x69   : > { %813 = vmatpush.msrb.mxu1 %v537_v19  ;;  %976 = vmatpush.msrb.mxu3 %v538_v16 }
  0x6a   : > { %895 = vmatpush.msrb.mxu2 %v537_v19  ;;  %1059 = vmatpush.msrb.mxu0 %v537_v19 }
  0x6b   : > { %814 = vmatpush.msrb.mxu1 %v536_v20  ;;  %977 = vmatpush.msrb.mxu3 %v537_v19 }
  0x6c   : > { %896 = vmatpush.msrb.mxu2 %v536_v20  ;;  %1060 = vmatpush.msrb.mxu0 %v536_v20 }
  0x6d   : > { %978 = vmatpush.msrb.mxu3 %v536_v20  ;;  %1139 = vmatpush.msra.mxu1 %v539_v15 }
  0x6f   : > { %1140 = vmatpush.msra.mxu1 %v538_v16 }
  0x71   : > { %1141 = vmatpush.msra.mxu1 %v537_v19 }
  0x73   : > { %1142 = vmatpush.msra.mxu1 %v536_v20 }
  0xe4   : > { %v508_v24 = vpop.f32.mrf.mxu0 }
  0xe5   : > { %v509_v25 = vadd.f32 %v2015_v23, %v508_v24  ;;  %v571_v29 = vpop.f32.mrf.mxu1 }
  0xe7   : > { %v516_v26 = vrot.slane %v509_v25, 2  ;;  %v517_v27 = vrot.slane %v509_v25, 4  ;;  %v518_v28 = vrot.slane %v509_v25, 6  ;;  %528 = vst [vmem:[#allocation2] sm:$0x3] %v509_v25 }
  0xe9   : > { %529 = vst [vmem:[#allocation2 + $0x2] sm:$0x3] %v516_v26 }
  0xea   : > { %530 = vst [vmem:[#allocation2 + $0x4] sm:$0x3] %v517_v27 }
  0xeb   : > { %531 = vst [vmem:[#allocation2 + $0x6] sm:$0x3] %v518_v28 }
  0xee   : > { %v550_v30 = vld [vmem:[#allocation2] sm:$0x3] }
  0xef   : > { %v574_v32 = vadd.f32 %v571_v29, %v550_v30 }
  0xf0   : > { %v631_v0 = vld [vmem:[#allocation2 + $0x2] sm:$0x3] }
  0xf1   : > { %v1446_v33 = vmul.f32 -1.442695, %v574_v32 }
  0xf3   : > { %1532 = vpow2.f32 %v1446_v33 }
  0xf9   : > { %v1533_v34 = vpop.eup %1532 }
  0xfa   : > { %v578_v35 = vadd.f32 1.0, %v1533_v34 }
  0xfc   : > { %1534 = vrcp.f32 %v578_v35  ;;  %v590_v41 = vand.u32 2147483648, %v578_v35  ;;  %v588_v43 = vand.u32 2147483647, %v578_v35  ;;  %vm584_vm4 = vweird.f32 %v578_v35 }
  0xfd   : > { %1536 = vtanh.f32 %v574_v32  ;;  %v713_v32 = vld [vmem:[#allocation2 + $0x4] sm:$0x3] }
  0xfe   : > { %v591_v45 = vor.u32 1.1754944e-38, %v590_v41  ;;  %vm589_vm7 = vcmp.eq.f32.partialorder %v588_v43, 8.507059e+37 }
 0x102   : > { %v1535_v36 = vpop.eup %1534 }
 0x103   : > { %v580_v38 = vmul.f32 %v1535_v36, %v578_v35  ;;  %vm585_vm3 = vweird.f32 %v1535_v36  ;;  %v1537_v47 = vpop.eup %1536 }
 0x104   : > { %vm586_vm6 = vmor %vm584_vm4, %vm585_vm3 }
 0x105   : > { %v581_v39 = vsub.f32 1.0, %v580_v38 }
 0x107   : > { %v582_v42 = vmul.f32 %v1535_v36, %v581_v39 }
 0x109   : > { %v583_v44 = vadd.f32 %v1535_v36, %v582_v42 }
 0x10b   : > { %v587_v46 = vsel %vm586_vm6, %v1535_v36, %v583_v44 }
 0x10c   : > { %v592_v48 = vsel %vm589_vm7, %v591_v45, %v587_v46 }
 0x10d   : > { %v595_v49 = vsel %vm547_vm5, %v592_v48, %v1537_v47 }
 0x10e   : > { %602 = vrot.lane.b32.xlu0 %v595_v49, %s1762_s18 }
 0x116   : > { %597 = vrot.lane.b32.xlu0 %v549_v50, %s1762_s18 }
 0x180   : > { %v603_v51 = vpop.permute.xlu0 %602 }
 0x181   : > { %v605_v52 = vmul.f32 %v603_v51, %v595_v49 }
 0x183   : > { %607 = vrot.lane.b32.xlu1 %v605_v52, %s1762_s18 }
 0x188   : > { %v598_v53 = vpop.permute.xlu0 %597 }
 0x189   : > { %v600_v54 = vmul.f32 %v598_v53, %v595_v49 }
 0x1f5   : > { %v608_v55 = vpop.permute.xlu1 %607 }
 0x1f6   : > { %v610_v56 = vadd.f32 %v608_v55, %v600_v54 }
 0x1f8   : > { %1538 = vtanh.f32 %v610_v56 }
 0x1fe   : > { %v1539_v57 = vpop.eup %1538 }
 0x1ff   : > { %613 = vrot.lane.b32.xlu1 %v1539_v57, %s1762_s18 }
 0x271   : > { %v614_v58 = vpop.permute.xlu1 %613 }
 0x272   : > { %v616_v59 = vmul.f32 %v614_v58, %v595_v49 }
 0x274   : > { %623 = vrot.lane.b32.xlu2 %v616_v59, %s1763_s21 }
 0x27c   : > { %618 = vrot.lane.b32.xlu2 %v610_v56, %s1764_s13 }
 0x2ce   : > { %v624_v60 = vpop.permute.xlu2 %623 }
 0x2cf   : > { %626 = vst.msk [vmem:[#allocation4] sm:$0x3] %vm541_vm1, %v624_v60 }
 0x2d0   : > { %627 = vst.msk [vmem:[#allocation3] sm:$0x3] %vm541_vm1, %v624_v60 }
 0x2d6   : > { %v619_v61 = vpop.permute.xlu2 %618  ;;  %v628_v62 = vld [vmem:[#allocation4] sm:$0x3] }
 0x2d7   : > { %621 = vst.msk [vmem:[#allocation5] sm:$0x3] %vm541_vm1, %v619_v61  ;;  %1447 = vmatmul.msk.f32.vlgmr.msra.gmra.mxu2 %vm486_vm2, %v628_v62 }
 0x2de   : > { %v629_v63 = vld [vmem:[#allocation5] sm:$0x3] }
 0x2df   : > { %678 = vrot.lane.b32.xlu1 %v629_v63, %s1762_s18 }
 0x351   : > { %v679_v20 = vpop.permute.xlu1 %678 }
 0x35a   : > { %v652_v1 = vpop.f32.mrf.mxu2 }
 0x35b   : > { %v655_v2 = vadd.f32 %v652_v1, %v631_v0  ;;  %v795_v0 = vld [vmem:[#allocation2 + $0x6] sm:$0x3] }
 0x35d   : > { %v1448_v3 = vmul.f32 -1.442695, %v655_v2 }
 0x35f   : > { %1540 = vpow2.f32 %v1448_v3 }
 0x365   : > { %v1541_v4 = vpop.eup %1540 }
 0x366   : > { %v659_v5 = vadd.f32 1.0, %v1541_v4 }
 0x368   : > { %1542 = vrcp.f32 %v659_v5  ;;  %v671_v9 = vand.u32 2147483648, %v659_v5  ;;  %v669_v11 = vand.u32 2147483647, %v659_v5  ;;  %vm665_vm9 = vweird.f32 %v659_v5 }
 0x369   : > { %1544 = vtanh.f32 %v655_v2 }
 0x36a   : > { %v672_v13 = vor.u32 1.1754944e-38, %v671_v9  ;;  %vm670_vm11 = vcmp.eq.f32.partialorder %v669_v11, 8.507059e+37 }
 0x36e   : > { %v1543_v6 = vpop.eup %1542 }
 0x36f   : > { %v661_v7 = vmul.f32 %v1543_v6, %v659_v5  ;;  %vm666_vm8 = vweird.f32 %v1543_v6  ;;  %v1545_v15 = vpop.eup %1544 }
 0x370   : > { %vm667_vm10 = vmor %vm665_vm9, %vm666_vm8 }
 0x371   : > { %v662_v8 = vsub.f32 1.0, %v661_v7 }
 0x373   : > { %v663_v10 = vmul.f32 %v1543_v6, %v662_v8 }
 0x375   : > { %v664_v12 = vadd.f32 %v1543_v6, %v663_v10 }
 0x377   : > { %v668_v14 = vsel %vm667_vm10, %v1543_v6, %v664_v12 }
 0x378   : > { %v673_v16 = vsel %vm670_vm11, %v672_v13, %v668_v14 }
 0x379   : > { %v676_v17 = vsel %vm547_vm5, %v673_v16, %v1545_v15 }
 0x37a   : > { %683 = vrot.lane.b32.xlu0 %v676_v17, %s1762_s18  ;;  %v681_v21 = vmul.f32 %v679_v20, %v676_v17 }
 0x3ec   : > { %v684_v18 = vpop.permute.xlu0 %683 }
 0x3ed   : > { %v686_v19 = vmul.f32 %v684_v18, %v676_v17 }
 0x3ef   : > { %688 = vrot.lane.b32.xlu2 %v686_v19, %s1762_s18 }
 0x449   : > { %v689_v22 = vpop.permute.xlu2 %688 }
 0x44a   : > { %v691_v24 = vadd.f32 %v689_v22, %v681_v21 }
 0x44c   : > { %1546 = vtanh.f32 %v691_v24  ;;  %699 = vrot.lane.b32.xlu2 %v691_v24, %s1764_s13 }
 0x452   : > { %v1547_v25 = vpop.eup %1546 }
 0x453   : > { %694 = vrot.lane.b32.xlu0 %v1547_v25, %s1762_s18 }
 0x4a6   : > { %v700_v26 = vpop.permute.xlu2 %699 }
 0x4a7   : > { %702 = vst.msk [vmem:[#allocation5] sm:$0x3] %vm541_vm1, %v700_v26 }
 0x4ae   : > { %v711_v29 = vld [vmem:[#allocation5] sm:$0x3] }
 0x4c5   : > { %v695_v27 = vpop.permute.xlu0 %694 }
 0x4c6   : > { %v697_v28 = vmul.f32 %v695_v27, %v676_v17 }
 0x4c8   : > { %704 = vrot.lane.b32.xlu1 %v697_v28, %s1763_s21 }
 0x4d0   : > { %760 = vrot.lane.b32.xlu1 %v711_v29, %s1762_s18 }
 0x53a   : > { %v705_v30 = vpop.permute.xlu1 %704 }
 0x53b   : > { %707 = vst.msk [vmem:[#allocation4] sm:$0x3] %vm541_vm1, %v705_v30 }
 0x53c   : > { %709 = vst.msk [vmem:[#allocation3 + $0x2] sm:$0x3] %vm541_vm1, %v705_v30  ;;  %v454_v30 = vld [vmem:[#allocation3 + $0x8] sm:$0x3] }
 0x53d   : > { %477 = vst [vmem:[#allocation1 + $0x20] ss:$4 sm:$0xff] %v454_v30 }
 0x542   : > { %v710_v31 = vld [vmem:[#allocation4] sm:$0x3]  ;;  %v761_v53 = vpop.permute.xlu1 %760 }
 0x543   : > { %1449 = vmatmul.msk.f32.vlgmr.msra.gmra.mxu3 %vm486_vm2, %v710_v31  ;;  %v455_v31 = vld [vmem:[#allocation3 + $0xa] sm:$0x3] }
 0x544   : > { %479 = vst [vmem:[#allocation1 + $0x21] ss:$4 sm:$0xff] %v455_v31 }
 0x5c6   : > { %v734_v33 = vpop.f32.mrf.mxu3 }
 0x5c7   : > { %v737_v34 = vadd.f32 %v734_v33, %v713_v32  ;;  %v456_v32 = vld [vmem:[#allocation3 + $0xc] sm:$0x3]  ;;  %v457_v33 = vld [vmem:[#allocation3 + $0xe] sm:$0x3] }
 0x5c8   : > { %481 = vst [vmem:[#allocation1 + $0x22] ss:$4 sm:$0xff] %v456_v32 }
 0x5c9   : > { %v1450_v35 = vmul.f32 -1.442695, %v737_v34  ;;  %483 = vst [vmem:[#allocation1 + $0x23] ss:$4 sm:$0xff] %v457_v33 }
 0x5cb   : > { %1548 = vpow2.f32 %v1450_v35 }
 0x5d1   : > { %v1549_v36 = vpop.eup %1548 }
 0x5d2   : > { %v741_v37 = vadd.f32 1.0, %v1549_v36 }
 0x5d4   : > { %1550 = vrcp.f32 %v741_v37  ;;  %v753_v42 = vand.u32 2147483648, %v741_v37  ;;  %v751_v44 = vand.u32 2147483647, %v741_v37  ;;  %vm747_vm13 = vweird.f32 %v741_v37 }
 0x5d5   : > { %1552 = vtanh.f32 %v737_v34  ;;  %v485_v34 = vld.sshfl [vmem:[#allocation1 + $0x20] sm:$0xff pattern:$0x73625140] }
 0x5d6   : > { %v754_v46 = vor.u32 1.1754944e-38, %v753_v42  ;;  %vm752_vm15 = vcmp.eq.f32.partialorder %v751_v44, 8.507059e+37  ;;  %1444 = vmatmul.msk.f32.gmra.mxu0 %vm486_vm2, %v485_v34 }
 0x5da   : > { %v1551_v38 = vpop.eup %1550 }
 0x5db   : > { %v743_v39 = vmul.f32 %v1551_v38, %v741_v37  ;;  %vm748_vm12 = vweird.f32 %v1551_v38  ;;  %v1553_v48 = vpop.eup %1552 }
 0x5dc   : > { %vm749_vm14 = vmor %vm747_vm13, %vm748_vm12 }
 0x5dd   : > { %v744_v41 = vsub.f32 1.0, %v743_v39 }
 0x5df   : > { %v745_v43 = vmul.f32 %v1551_v38, %v744_v41 }
 0x5e1   : > { %v746_v45 = vadd.f32 %v1551_v38, %v745_v43 }
 0x5e3   : > { %v750_v47 = vsel %vm749_vm14, %v1551_v38, %v746_v45 }
 0x5e4   : > { %v755_v49 = vsel %vm752_vm15, %v754_v46, %v750_v47 }
 0x5e5   : > { %v758_v50 = vsel %vm547_vm5, %v755_v49, %v1553_v48 }
 0x5e6   : > { %765 = vrot.lane.b32.xlu0 %v758_v50, %s1762_s18  ;;  %v763_v54 = vmul.f32 %v761_v53, %v758_v50 }
 0x653   : > { %v511_v37 = vpop.f32.mrf.mxu0 }
 0x654   : > { %v512_v38 = vadd.f32 %v2015_v23, %v511_v37 }
 0x656   : > { %v519_v39 = vrot.slane %v512_v38, 2  ;;  %v520_v41 = vrot.slane %v512_v38, 4  ;;  %v521_v42 = vrot.slane %v512_v38, 6  ;;  %532 = vst [vmem:[#allocation2 + $0x8] sm:$0x3] %v512_v38 }
 0x658   : > { %v766_v51 = vpop.permute.xlu0 %765  ;;  %533 = vst [vmem:[#allocation2 + $0xa] sm:$0x3] %v519_v39 }
 0x659   : > { %v768_v52 = vmul.f32 %v766_v51, %v758_v50  ;;  %534 = vst [vmem:[#allocation2 + $0xc] sm:$0x3] %v520_v41 }
 0x65a   : > { %535 = vst [vmem:[#allocation2 + $0xe] sm:$0x3] %v521_v42 }
 0x65b   : > { %770 = vrot.lane.b32.xlu2 %v768_v52, %s1762_s18 }
 0x65d   : > { %v877_v43 = vld [vmem:[#allocation2 + $0x8] sm:$0x3] }
 0x660   : > { %v1041_v42 = vld [vmem:[#allocation2 + $0xc] sm:$0x3] }
 0x6b5   : > { %v771_v55 = vpop.permute.xlu2 %770 }
 0x6b6   : > { %v773_v56 = vadd.f32 %v771_v55, %v763_v54 }
 0x6b8   : > { %1554 = vtanh.f32 %v773_v56  ;;  %781 = vrot.lane.b32.xlu2 %v773_v56, %s1764_s13 }
 0x6be   : > { %v1555_v57 = vpop.eup %1554 }
 0x6bf   : > { %776 = vrot.lane.b32.xlu0 %v1555_v57, %s1762_s18 }
 0x712   : > { %v782_v58 = vpop.permute.xlu2 %781 }
 0x713   : > { %784 = vst.msk [vmem:[#allocation5] sm:$0x3] %vm541_vm1, %v782_v58 }
 0x71a   : > { %v793_v61 = vld [vmem:[#allocation5] sm:$0x3] }
 0x731   : > { %v777_v59 = vpop.permute.xlu0 %776 }
 0x732   : > { %v779_v60 = vmul.f32 %v777_v59, %v758_v50 }
 0x734   : > { %786 = vrot.lane.b32.xlu1 %v779_v60, %s1763_s21 }
 0x73c   : > { %842 = vrot.lane.b32.xlu1 %v793_v61, %s1762_s18 }
 0x7a6   : > { %v787_v62 = vpop.permute.xlu1 %786 }
 0x7a7   : > { %789 = vst.msk [vmem:[#allocation4] sm:$0x3] %vm541_vm1, %v787_v62 }
 0x7a8   : > { %791 = vst.msk [vmem:[#allocation3 + $0x4] sm:$0x3] %vm541_vm1, %v787_v62 }
 0x7ae   : > { %v792_v63 = vld [vmem:[#allocation4] sm:$0x3]  ;;  %v843_v20 = vpop.permute.xlu1 %842 }
 0x7af   : > { %1451 = vmatmul.msk.f32.vlgmr.msrb.gmra.mxu1 %vm486_vm2, %v792_v63 }
 0x82c   : > { %v816_v1 = vpop.f32.mrf.mxu1 }
 0x82d   : > { %v819_v2 = vadd.f32 %v816_v1, %v795_v0 }
 0x82f   : > { %v1452_v3 = vmul.f32 -1.442695, %v819_v2 }
 0x831   : > { %1556 = vpow2.f32 %v1452_v3 }
 0x837   : > { %v1557_v4 = vpop.eup %1556 }
 0x838   : > { %v823_v5 = vadd.f32 1.0, %v1557_v4 }
 0x83a   : > { %1558 = vrcp.f32 %v823_v5  ;;  %v835_v9 = vand.u32 2147483648, %v823_v5  ;;  %v833_v11 = vand.u32 2147483647, %v823_v5  ;;  %vm829_vm3 = vweird.f32 %v823_v5 }
 0x83b   : > { %1560 = vtanh.f32 %v819_v2 }
 0x83c   : > { %v836_v13 = vor.u32 1.1754944e-38, %v835_v9  ;;  %vm834_vm6 = vcmp.eq.f32.partialorder %v833_v11, 8.507059e+37  ;;  %v959_v9 = vld [vmem:[#allocation2 + $0xa] sm:$0x3] }
 0x840   : > { %v1559_v6 = vpop.eup %1558 }
 0x841   : > { %v825_v7 = vmul.f32 %v1559_v6, %v823_v5  ;;  %vm830_vm0 = vweird.f32 %v1559_v6  ;;  %v1561_v15 = vpop.eup %1560 }
 0x842   : > { %vm831_vm4 = vmor %vm829_vm3, %vm830_vm0 }
 0x843   : > { %v826_v8 = vsub.f32 1.0, %v825_v7 }
 0x845   : > { %v827_v10 = vmul.f32 %v1559_v6, %v826_v8 }
 0x847   : > { %v828_v12 = vadd.f32 %v1559_v6, %v827_v10 }
 0x849   : > { %v832_v14 = vsel %vm831_vm4, %v1559_v6, %v828_v12 }
 0x84a   : > { %v837_v16 = vsel %vm834_vm6, %v836_v13, %v832_v14 }
 0x84b   : > { %v840_v17 = vsel %vm547_vm5, %v837_v16, %v1561_v15 }
 0x84c   : > { %847 = vrot.lane.b32.xlu0 %v840_v17, %s1762_s18  ;;  %v845_v21 = vmul.f32 %v843_v20, %v840_v17 }
 0x8be   : > { %v848_v18 = vpop.permute.xlu0 %847 }
 0x8bf   : > { %v850_v19 = vmul.f32 %v848_v18, %v840_v17 }
 0x8c1   : > { %852 = vrot.lane.b32.xlu2 %v850_v19, %s1762_s18 }
 0x91b   : > { %v853_v22 = vpop.permute.xlu2 %852 }
 0x91c   : > { %v855_v24 = vadd.f32 %v853_v22, %v845_v21 }
 0x91e   : > { %1562 = vtanh.f32 %v855_v24  ;;  %863 = vrot.lane.b32.xlu2 %v855_v24, %s1764_s13 }
 0x924   : > { %v1563_v25 = vpop.eup %1562 }
 0x925   : > { %858 = vrot.lane.b32.xlu0 %v1563_v25, %s1762_s18 }
 0x978   : > { %v864_v26 = vpop.permute.xlu2 %863 }
 0x979   : > { %866 = vst.msk [vmem:[#allocation5] sm:$0x3] %vm541_vm1, %v864_v26 }
 0x980   : > { %v875_v29 = vld [vmem:[#allocation5] sm:$0x3] }
 0x997   : > { %v859_v27 = vpop.permute.xlu0 %858 }
 0x998   : > { %v861_v28 = vmul.f32 %v859_v27, %v840_v17 }
 0x99a   : > { %868 = vrot.lane.b32.xlu1 %v861_v28, %s1763_s21 }
 0x9a2   : > { %924 = vrot.lane.b32.xlu1 %v875_v29, %s1762_s18 }
 0xa0c   : > { %v869_v35 = vpop.permute.xlu1 %868 }
 0xa0d   : > { %871 = vst.msk [vmem:[#allocation4] sm:$0x3] %vm541_vm1, %v869_v35 }
 0xa0e   : > { %873 = vst.msk [vmem:[#allocation3 + $0x6] sm:$0x3] %vm541_vm1, %v869_v35 }
 0xa14   : > { %v874_v36 = vld [vmem:[#allocation4] sm:$0x3]  ;;  %v925_v62 = vpop.permute.xlu1 %924 }
 0xa15   : > { %1453 = vmatmul.msk.f32.vlgmr.msrb.gmra.mxu2 %vm486_vm2, %v874_v36 }
 0xa98   : > { %v898_v44 = vpop.f32.mrf.mxu2 }
 0xa99   : > { %v901_v45 = vadd.f32 %v898_v44, %v877_v43 }
 0xa9b   : > { %v1454_v46 = vmul.f32 -1.442695, %v901_v45 }
 0xa9d   : > { %1564 = vpow2.f32 %v1454_v46 }
 0xaa3   : > { %v1565_v47 = vpop.eup %1564 }
 0xaa4   : > { %v905_v48 = vadd.f32 1.0, %v1565_v47 }
 0xaa6   : > { %1566 = vrcp.f32 %v905_v48  ;;  %v917_v23 = vand.u32 2147483648, %v905_v48  ;;  %v915_v53 = vand.u32 2147483647, %v905_v48  ;;  %vm911_vm8 = vweird.f32 %v905_v48 }
 0xaa7   : > { %1568 = vtanh.f32 %v901_v45 }
 0xaa8   : > { %v918_v55 = vor.u32 1.1754944e-38, %v917_v23  ;;  %vm916_vm10 = vcmp.eq.f32.partialorder %v915_v53, 8.507059e+37 }
 0xaac   : > { %v1567_v49 = vpop.eup %1566 }
 0xaad   : > { %v907_v50 = vmul.f32 %v1567_v49, %v905_v48  ;;  %vm912_vm7 = vweird.f32 %v1567_v49  ;;  %v1569_v57 = vpop.eup %1568 }
 0xaae   : > { %vm913_vm9 = vmor %vm911_vm8, %vm912_vm7 }
 0xaaf   : > { %v908_v51 = vsub.f32 1.0, %v907_v50 }
 0xab1   : > { %v909_v52 = vmul.f32 %v1567_v49, %v908_v51 }
 0xab3   : > { %v910_v54 = vadd.f32 %v1567_v49, %v909_v52 }
 0xab5   : > { %v914_v56 = vsel %vm913_vm9, %v1567_v49, %v910_v54 }
 0xab6   : > { %v919_v58 = vsel %vm916_vm10, %v918_v55, %v914_v56 }
 0xab7   : > { %v922_v59 = vsel %vm547_vm5, %v919_v58, %v1569_v57 }
 0xab8   : > { %929 = vrot.lane.b32.xlu0 %v922_v59, %s1762_s18  ;;  %v927_v63 = vmul.f32 %v925_v62, %v922_v59 }
 0xb2a   : > { %v930_v60 = vpop.permute.xlu0 %929 }
 0xb2b   : > { %v932_v61 = vmul.f32 %v930_v60, %v922_v59 }
 0xb2d   : > { %934 = vrot.lane.b32.xlu2 %v932_v61, %s1762_s18 }
 0xb87   : > { %v935_v0 = vpop.permute.xlu2 %934 }
 0xb88   : > { %v937_v1 = vadd.f32 %v935_v0, %v927_v63 }
 0xb8a   : > { %1570 = vtanh.f32 %v937_v1  ;;  %945 = vrot.lane.b32.xlu2 %v937_v1, %s1764_s13 }
 0xb90   : > { %v1571_v2 = vpop.eup %1570 }
 0xb91   : > { %940 = vrot.lane.b32.xlu0 %v1571_v2, %s1762_s18 }
 0xbe4   : > { %v946_v3 = vpop.permute.xlu2 %945 }
 0xbe5   : > { %948 = vst.msk [vmem:[#allocation5] sm:$0x3] %vm541_vm1, %v946_v3 }
 0xbec   : > { %v957_v6 = vld [vmem:[#allocation5] sm:$0x3] }
 0xc03   : > { %v941_v4 = vpop.permute.xlu0 %940 }
 0xc04   : > { %v943_v5 = vmul.f32 %v941_v4, %v922_v59 }
 0xc06   : > { %950 = vrot.lane.b32.xlu1 %v943_v5, %s1763_s21 }
 0xc0e   : > { %1006 = vrot.lane.b32.xlu1 %v957_v6, %s1762_s18 }
 0xc78   : > { %v951_v7 = vpop.permute.xlu1 %950 }
 0xc79   : > { %953 = vst.msk [vmem:[#allocation4] sm:$0x3] %vm541_vm1, %v951_v7 }
 0xc7a   : > { %955 = vst.msk [vmem:[#allocation3 + $0x8] sm:$0x3] %vm541_vm1, %v951_v7 }
 0xc80   : > { %v956_v8 = vld [vmem:[#allocation4] sm:$0x3]  ;;  %v1007_v30 = vpop.permute.xlu1 %1006 }
 0xc81   : > { %1455 = vmatmul.msk.f32.vlgmr.msrb.gmra.mxu3 %vm486_vm2, %v956_v8  ;;  %v1123_v8 = vld [vmem:[#allocation2 + $0xe] sm:$0x3] }
 0xd04   : > { %v980_v10 = vpop.f32.mrf.mxu3 }
 0xd05   : > { %v983_v11 = vadd.f32 %v980_v10, %v959_v9 }
 0xd07   : > { %v1456_v12 = vmul.f32 -1.442695, %v983_v11 }
 0xd09   : > { %1572 = vpow2.f32 %v1456_v12 }
 0xd0f   : > { %v1573_v13 = vpop.eup %1572 }
 0xd10   : > { %v987_v14 = vadd.f32 1.0, %v1573_v13 }
 0xd12   : > { %1574 = vrcp.f32 %v987_v14  ;;  %v999_v18 = vand.u32 2147483648, %v987_v14  ;;  %v997_v20 = vand.u32 2147483647, %v987_v14  ;;  %vm993_vm12 = vweird.f32 %v987_v14 }
 0xd13   : > { %1576 = vtanh.f32 %v983_v11 }
 0xd14   : > { %v1000_v22 = vor.u32 1.1754944e-38, %v999_v18  ;;  %vm998_vm14 = vcmp.eq.f32.partialorder %v997_v20, 8.507059e+37 }
 0xd18   : > { %v1575_v15 = vpop.eup %1574 }
 0xd19   : > { %v989_v16 = vmul.f32 %v1575_v15, %v987_v14  ;;  %vm994_vm11 = vweird.f32 %v1575_v15  ;;  %v1577_v25 = vpop.eup %1576 }
 0xd1a   : > { %vm995_vm13 = vmor %vm993_vm12, %vm994_vm11 }
 0xd1b   : > { %v990_v17 = vsub.f32 1.0, %v989_v16 }
 0xd1d   : > { %v991_v19 = vmul.f32 %v1575_v15, %v990_v17 }
 0xd1f   : > { %v992_v21 = vadd.f32 %v1575_v15, %v991_v19 }
 0xd21   : > { %v996_v24 = vsel %vm995_vm13, %v1575_v15, %v992_v21 }
 0xd22   : > { %v1001_v26 = vsel %vm998_vm14, %v1000_v22, %v996_v24 }
 0xd23   : > { %v1004_v27 = vsel %vm547_vm5, %v1001_v26, %v1577_v25 }
 0xd24   : > { %1011 = vrot.lane.b32.xlu0 %v1004_v27, %s1762_s18  ;;  %v1009_v31 = vmul.f32 %v1007_v30, %v1004_v27 }
 0xd96   : > { %v1012_v28 = vpop.permute.xlu0 %1011 }
 0xd97   : > { %v1014_v29 = vmul.f32 %v1012_v28, %v1004_v27 }
 0xd99   : > { %1016 = vrot.lane.b32.xlu2 %v1014_v29, %s1762_s18 }
 0xdf3   : > { %v1017_v32 = vpop.permute.xlu2 %1016 }
 0xdf4   : > { %v1019_v33 = vadd.f32 %v1017_v32, %v1009_v31 }
 0xdf6   : > { %1578 = vtanh.f32 %v1019_v33  ;;  %1027 = vrot.lane.b32.xlu2 %v1019_v33, %s1764_s13 }
 0xdfc   : > { %v1579_v34 = vpop.eup %1578 }
 0xdfd   : > { %1022 = vrot.lane.b32.xlu0 %v1579_v34, %s1762_s18 }
 0xe50   : > { %v1028_v35 = vpop.permute.xlu2 %1027 }
 0xe51   : > { %1030 = vst.msk [vmem:[#allocation5] sm:$0x3] %vm541_vm1, %v1028_v35 }
 0xe58   : > { %v1039_v38 = vld [vmem:[#allocation5] sm:$0x3] }
 0xe6f   : > { %v1023_v36 = vpop.permute.xlu0 %1022 }
 0xe70   : > { %v1025_v37 = vmul.f32 %v1023_v36, %v1004_v27 }
 0xe72   : > { %1032 = vrot.lane.b32.xlu1 %v1025_v37, %s1763_s21 }
 0xe7a   : > { %1088 = vrot.lane.b32.xlu1 %v1039_v38, %s1762_s18 }
 0xee4   : > { %v1033_v39 = vpop.permute.xlu1 %1032 }
 0xee5   : > { %1035 = vst.msk [vmem:[#allocation4] sm:$0x3] %vm541_vm1, %v1033_v39 }
 0xee6   : > { %1037 = vst.msk [vmem:[#allocation3 + $0xa] sm:$0x3] %vm541_vm1, %v1033_v39 }
 0xeec   : > { %v1038_v41 = vld [vmem:[#allocation4] sm:$0x3]  ;;  %v1089_v61 = vpop.permute.xlu1 %1088 }
 0xeed   : > { %1457 = vmatmul.msk.f32.vlgmr.msrb.gmra.mxu0 %vm486_vm2, %v1038_v41 }
 0xf6a   : > { %v1062_v43 = vpop.f32.mrf.mxu0 }
 0xf6b   : > { %v1065_v44 = vadd.f32 %v1062_v43, %v1041_v42 }
 0xf6d   : > { %v1458_v45 = vmul.f32 -1.442695, %v1065_v44 }
 0xf6f   : > { %1580 = vpow2.f32 %v1458_v45 }
 0xf75   : > { %v1581_v46 = vpop.eup %1580 }
 0xf76   : > { %v1069_v47 = vadd.f32 1.0, %v1581_v46 }
 0xf78   : > { %1582 = vrcp.f32 %v1069_v47  ;;  %v1081_v51 = vand.u32 2147483648, %v1069_v47  ;;  %v1079_v52 = vand.u32 2147483647, %v1069_v47  ;;  %vm1075_vm0 = vweird.f32 %v1069_v47 }
 0xf79   : > { %1584 = vtanh.f32 %v1065_v44 }
 0xf7a   : > { %v1082_v54 = vor.u32 1.1754944e-38, %v1081_v51  ;;  %vm1080_vm4 = vcmp.eq.f32.partialorder %v1079_v52, 8.507059e+37 }
 0xf7e   : > { %v1583_v48 = vpop.eup %1582 }
 0xf7f   : > { %v1071_v49 = vmul.f32 %v1583_v48, %v1069_v47  ;;  %vm1076_vm15 = vweird.f32 %v1583_v48  ;;  %v1585_v56 = vpop.eup %1584 }
 0xf80   : > { %vm1077_vm3 = vmor %vm1075_vm0, %vm1076_vm15 }
 0xf81   : > { %v1072_v50 = vsub.f32 1.0, %v1071_v49 }
 0xf83   : > { %v1073_v23 = vmul.f32 %v1583_v48, %v1072_v50 }
 0xf85   : > { %v1074_v53 = vadd.f32 %v1583_v48, %v1073_v23 }
 0xf87   : > { %v1078_v55 = vsel %vm1077_vm3, %v1583_v48, %v1074_v53 }
 0xf88   : > { %v1083_v57 = vsel %vm1080_vm4, %v1082_v54, %v1078_v55 }
 0xf89   : > { %v1086_v58 = vsel %vm547_vm5, %v1083_v57, %v1585_v56 }
 0xf8a   : > { %1093 = vrot.lane.b32.xlu0 %v1086_v58, %s1762_s18  ;;  %v1091_v62 = vmul.f32 %v1089_v61, %v1086_v58 }
 0xffc   : > { %v1094_v59 = vpop.permute.xlu0 %1093 }
 0xffd   : > { %v1096_v60 = vmul.f32 %v1094_v59, %v1086_v58 }
 0xfff   : > { %1098 = vrot.lane.b32.xlu2 %v1096_v60, %s1762_s18 }
0x1059   : > { %v1099_v63 = vpop.permute.xlu2 %1098 }
0x105a   : > { %v1101_v0 = vadd.f32 %v1099_v63, %v1091_v62 }
0x105c   : > { %1586 = vtanh.f32 %v1101_v0  ;;  %1109 = vrot.lane.b32.xlu2 %v1101_v0, %s1764_s13 }
0x1062   : > { %v1587_v1 = vpop.eup %1586 }
0x1063   : > { %1104 = vrot.lane.b32.xlu0 %v1587_v1, %s1762_s18 }
0x10b6   : > { %v1110_v2 = vpop.permute.xlu2 %1109 }
0x10b7   : > { %1112 = vst.msk [vmem:[#allocation5] sm:$0x3] %vm541_vm1, %v1110_v2 }
0x10be   : > { %v1121_v5 = vld [vmem:[#allocation5] sm:$0x3] }
0x10d5   : > { %v1105_v3 = vpop.permute.xlu0 %1104 }
0x10d6   : > { %v1107_v4 = vmul.f32 %v1105_v3, %v1086_v58 }
0x10d8   : > { %1114 = vrot.lane.b32.xlu1 %v1107_v4, %s1763_s21 }
0x10e0   : > { %1170 = vrot.lane.b32.xlu1 %v1121_v5, %s1762_s18 }
0x114a   : > { %v1115_v6 = vpop.permute.xlu1 %1114 }
0x114b   : > { %1117 = vst.msk [vmem:[#allocation4] sm:$0x3] %vm541_vm1, %v1115_v6 }
0x114c   : > { %1119 = vst.msk [vmem:[#allocation3 + $0xc] sm:$0x3] %vm541_vm1, %v1115_v6 }
0x1152   : > { %v1120_v7 = vld [vmem:[#allocation4] sm:$0x3]  ;;  %v1171_v29 = vpop.permute.xlu1 %1170 }
0x1153   : > { %1459 = vmatmul.msk.f32.vlgmr.msra.gmra.mxu1 %vm486_vm2, %v1120_v7 }
0x11d0   : > { %v1144_v9 = vpop.f32.mrf.mxu1 }
0x11d1   : > { %v1147_v10 = vadd.f32 %v1144_v9, %v1123_v8 }
0x11d3   : > { %v1460_v11 = vmul.f32 -1.442695, %v1147_v10 }
0x11d5   : > { %1588 = vpow2.f32 %v1460_v11 }
0x11db   : > { %v1589_v12 = vpop.eup %1588 }
0x11dc   : > { %v1151_v13 = vadd.f32 1.0, %v1589_v12 }
0x11de   : > { %1590 = vrcp.f32 %v1151_v13  ;;  %v1163_v17 = vand.u32 2147483648, %v1151_v13  ;;  %v1161_v19 = vand.u32 2147483647, %v1151_v13  ;;  %vm1157_vm7 = vweird.f32 %v1151_v13 }
0x11df   : > { %1592 = vtanh.f32 %v1147_v10 }
0x11e0   : > { %v1164_v21 = vor.u32 1.1754944e-38, %v1163_v17  ;;  %vm1162_vm2 = vcmp.eq.f32.partialorder %v1161_v19, 8.507059e+37 }
0x11e4   : > { %v1591_v14 = vpop.eup %1590 }
0x11e5   : > { %v1153_v15 = vmul.f32 %v1591_v14, %v1151_v13  ;;  %vm1158_vm6 = vweird.f32 %v1591_v14  ;;  %v1593_v24 = vpop.eup %1592 }
0x11e6   : > { %vm1159_vm8 = vmor %vm1157_vm7, %vm1158_vm6 }
0x11e7   : > { %v1154_v16 = vsub.f32 1.0, %v1153_v15 }
0x11e9   : > { %v1155_v18 = vmul.f32 %v1591_v14, %v1154_v16 }
0x11eb   : > { %v1156_v20 = vadd.f32 %v1591_v14, %v1155_v18 }
0x11ed   : > { %v1160_v22 = vsel %vm1159_vm8, %v1591_v14, %v1156_v20 }
0x11ee   : > { %v1165_v25 = vsel %vm1162_vm2, %v1164_v21, %v1160_v22 }
0x11ef   : > { %v1168_v26 = vsel %vm547_vm5, %v1165_v25, %v1593_v24 }
0x11f0   : > { %1175 = vrot.lane.b32.xlu0 %v1168_v26, %s1762_s18  ;;  %v1173_v30 = vmul.f32 %v1171_v29, %v1168_v26 }
0x1262   : > { %v1176_v27 = vpop.permute.xlu0 %1175 }
0x1263   : > { %v1178_v28 = vmul.f32 %v1176_v27, %v1168_v26 }
0x1265   : > { %1180 = vrot.lane.b32.xlu2 %v1178_v28, %s1762_s18 }
0x12bf   : > { %v1181_v31 = vpop.permute.xlu2 %1180 }
0x12c0   : > { %v1183_v32 = vadd.f32 %v1181_v31, %v1173_v30 }
0x12c2   : > { %1594 = vtanh.f32 %v1183_v32  ;;  %1191 = vrot.lane.b32.xlu1 %v1183_v32, %s1764_s13 }
0x12c8   : > { %v1595_v33 = vpop.eup %1594 }
0x12c9   : > { %1186 = vrot.lane.b32.xlu0 %v1595_v33, %s1762_s18 }
0x1334   : > { %v1192_v40 = vpop.permute.xlu1 %1191 }
0x1335   : > { %1194 = vst.msk [vmem:[#allocation5] sm:$0x3] %vm541_vm1, %v1192_v40 }
0x133b   : > { %v1187_v34 = vpop.permute.xlu0 %1186 }
0x133c   : > { %v1204_v35 = vld [vmem:[#allocation5] sm:$0x3]  ;;  %v1189_v36 = vmul.f32 %v1187_v34, %v1168_v26 }
0x133d   : > { %1205 = vst.msk [vmem:[%s1971_s19] sm:$0x3] %vm541_vm1, %v1204_v35 }
0x133e   : > { %1196 = vrot.lane.b32.xlu2 %v1189_v36, %s1763_s21 }
0x1398   : > { %v1197_v37 = vpop.permute.xlu2 %1196 }
0x1399   : > { %1199 = vst.msk [vmem:[#allocation4] sm:$0x3] %vm541_vm1, %v1197_v37 }
0x139a   : > { %1201 = vst.msk [vmem:[#allocation3 + $0xe] sm:$0x3] %vm541_vm1, %v1197_v37 }
0x139d   : > { %1209 = sbr.rel (%p1461_p3) target bundleno = 5035 (0x13ab), region = 60 }
0x13a0   : > { %v1202_v38 = vld [vmem:[#allocation4] sm:$0x3] }
0x13a1   : > { %1203 = vst.msk [vmem:[%s1969_s15] sm:$0x3] %vm541_vm1, %v1202_v38 }
0x13a2   : > { %v1210_v39 = vld [vmem:[#allocation3] sm:$0x3]  ;;  %v1211_v41 = vld [vmem:[#allocation3 + $0x2] sm:$0x3]  ;;  %v1212_v42 = vld [vmem:[#allocation3 + $0x4] sm:$0x3] }
0x13a3   : > { %1218 = vst.msk [vmem:[%s2212_s6] sm:$0x3] %vm541_vm1, %v1210_v39  ;;  %v1213_v43 = vld [vmem:[#allocation3 + $0x6] sm:$0x3]  ;;  %v1214_v44 = vld [vmem:[#allocation3 + $0x8] sm:$0x3] }
0x13a4   : > { %1219 = vst.msk [vmem:[%s2212_s6 + $0x2] sm:$0x3] %vm541_vm1, %v1211_v41  ;;  %v1215_v45 = vld [vmem:[#allocation3 + $0xa] sm:$0x3]  ;;  %v1216_v46 = vld [vmem:[#allocation3 + $0xc] sm:$0x3] }
0x13a5   : > { %1220 = vst.msk [vmem:[%s2212_s6 + $0x4] sm:$0x3] %vm541_vm1, %v1212_v42  ;;  %v1217_v47 = vld [vmem:[#allocation3 + $0xe] sm:$0x3] }
0x13a6   : > { %1221 = vst.msk [vmem:[%s2212_s6 + $0x6] sm:$0x3] %vm541_vm1, %v1213_v43 }
0x13a7   : > { %1222 = vst.msk [vmem:[%s2212_s6 + $0x8] sm:$0x3] %vm541_vm1, %v1214_v44 }
0x13a8   : > { %1223 = vst.msk [vmem:[%s2212_s6 + $0xa] sm:$0x3] %vm541_vm1, %v1215_v45 }
0x13a9   : > { %1224 = vst.msk [vmem:[%s2212_s6 + $0xc] sm:$0x3] %vm541_vm1, %v1216_v46 }
0x13aa   : > { %1225 = vst.msk [vmem:[%s2212_s6 + $0xe] sm:$0x3] %vm541_vm1, %v1217_v47 }
0x13ab PF: > { %s1464_s14 = sshll.u32 %s1831_s9, 1  ;;  %s1247_s22 = sshll.u32 %s1969_s15, 4  ;;  %s1248_s22 = int_to_ptr.vmem [resolvable:$true] %s1247_s22 }
0x13ac   : > { %s1245_s16 = scalar_lea.hbm %s2213_s7, %s1464_s14  ;;  %s1227_s27 = scalar_lea.sflag [#allocation8], %s1932_s1 }
0x13ad   : > { %s1249_s23 = sshll.u32 %s1245_s16, 4  ;;  %s1676_s9 = scalar_lea.hbm %s2213_s7, 4  ;;  %s1250_s23 = int_to_ptr.hbm [resolvable:$true] %s1249_s23 }
0x13ae   : > { %s1670_s20 = sshra.s32 %s1250_s23, 4  ;;  %s1671_s20 = int_to_ptr.hbm [resolvable:$true] %s1670_s20 }
0x13af   : > { %s1672_s12 = scalar_lea.hbm %s1671_s20, 2  ;;  %p1677_p0 = scmp.lt.s32.totalorder %s1671_s20, %s2213_s7 }
0x13b0   : > { %p1673_p10 = scmp.ne.s32.totalorder %s1671_s20, %s1672_s12  ;;  %p1678_p1 = scmp.lt.s32.totalorder %s1676_s9, %s1672_s12 }
0x13b2   : > { %p1674_p2 = pnand %p1673_p10, %p1860_p11  ;;  %p1679_p4 = por %p1678_p1, %p1677_p0 }
0x13b4   : > { %p1675_p9 = pneg %p1674_p2 }
0x13b6   : > { %p1680_p7 = pnand %p1679_p4, %p1675_p9 }
0x13b8   : > { %1683 = shalt.err (!%p1680_p7)
}
0x13b9   : > { %1474 = dma.vmem_to_hbm [thread:$0]  (%p1860_p11), %s1248_s22, 32, %s1250_s23, %s1227_s27  }
0x13ba   : > { %s1259_s21 = scalar_lea.hbm %s2214_s8, %s1464_s14  ;;  %s1261_s13 = sshll.u32 %s1971_s19, 4  ;;  %s1262_s13 = int_to_ptr.vmem [resolvable:$true] %s1261_s13 }
0x13bb   : > { %s1263_s10 = sshll.u32 %s1259_s21, 4  ;;  %s1232_s11 = scalar_lea.sflag [#allocation13], %s1932_s1  ;;  %s1264_s10 = int_to_ptr.hbm [resolvable:$true] %s1263_s10 }
0x13bc   : > { %s1698_s16 = sshra.s32 %s1264_s10, 4  ;;  %s1704_s22 = scalar_lea.hbm %s2214_s8, 4  ;;  %s1699_s16 = int_to_ptr.hbm [resolvable:$true] %s1698_s16 }
0x13bd   : > { %s1700_s20 = scalar_lea.hbm %s1699_s16, 2  ;;  %p1705_p6 = scmp.lt.s32.totalorder %s1699_s16, %s2214_s8 }
0x13be   : > { %p1701_p5 = scmp.ne.s32.totalorder %s1699_s16, %s1700_s20  ;;  %p1706_p3 = scmp.lt.s32.totalorder %s1704_s22, %s1700_s20 }
0x13c0   : > { %p1702_p8 = pnand %p1701_p5, %p1860_p11  ;;  %p1707_p10 = por %p1706_p3, %p1705_p6 }
0x13c2   : > { %p1703_p13 = pneg %p1702_p8 }
0x13c4   : > { %p1708_p2 = pnand %p1707_p10, %p1703_p13 }
0x13c6   : > { %1711 = shalt.err (!%p1708_p2)
}
0x13c7   : > { %1475 = dma.vmem_to_hbm [thread:$0]  (%p1860_p11), %s1262_s13, 32, %s1264_s10, %s1232_s11  }
0x13c8 PF: > { %s2237_s1 = sld [smem:[#allocation18_spill]]  ;;  %p2239_p9 = scmp.ge.s32.totalorder %s1758_s30, 2 }
0x13ca   : > { %p1486_p0 = pnand %p2239_p9, %p1864_p12 }
0x13cc   : > { %p1487_p1 = pneg %p1486_p0 }
0x13ce   : > { %s1278_s14 = sand.u32 1, %s2237_s1  }
0x13cf   : > { %s1279_s24 = scalar_lea.sflag [#allocation8], %s1278_s14 }
0x13d0   : > { %1737 = dma.done.wait (%p1487_p1), %s1279_s24, 32  }
0x13d1   : > { %1739 = vsyncadd (%p1487_p1), %s1279_s24, 4294967264  ;;  %s1289_s9 = scalar_lea.sflag [#allocation13], %s1278_s14 }
0x13d2   : > { %1741 = dma.done.wait (%p1487_p1), %s1289_s9, 32  }
0x13d3   : > { %1743 = vsyncadd (%p1487_p1), %s1289_s9, 4294967264  ;;  %s2240_s30 = sld [smem:[#allocation20_spill]]  ;;  %s2243_s27 = smov %s1750_s28 }
0x13d4   : > { %s2241_s26 = sld [smem:[#allocation19_spill]] }
0x13d5   : > { %s2242_s29 = sld [smem:[#allocation21_spill]] }
0x13d9   : > { %p28_p11 = scmp.ge.s32.totalorder %s2240_s30, 4  }
0x13da   : > { %s2244_s28 = smov %s2241_s26 }
0x13db   :  { %30 = sbr.rel (!%p28_p11) target bundleno = 11 (0xb), region = 165 }
0x13e0   :  { %1295 = vsyncpa [#allocation7], 1 }
0x13e1   :  { %1297 = vsyncpa [#allocation7 + $0x1], 1 }
0x13e2   :  { %1298 = vsyncpa [#allocation10], 1 }
0x13e3   :  { %1300 = vsyncpa [#allocation10 + $0x1], 1 }
0x13e4   :  { %1301 = vsyncpa [#allocation8], 1 }
0x13e5   :  { %1303 = vsyncpa [#allocation8 + $0x1], 1 }
0x13e6   :  { %1304 = vsyncpa [#allocation13], 1 }
0x13e7   :  { %1306 = vsyncpa [#allocation13 + $0x1], 1 }

</bundles_post_ra>
